<compile_context>
chip_gen: v6e
topology: v6e:2x2x1
jax: 0.10.0
libtpu: 0.0.40
codegen_flags: <defaults>
</compile_context>

<pallas_src>
import numpy as np
import jax
import jax.numpy as jnp
from jax import lax
from jax.experimental import pallas as pl
from jax.experimental.pallas import tpu as pltpu


# ---------------- weight preprocessing (plain JAX, traced under jit) ----------------

def _flip_hwio(w_t):
    # PyTorch ConvTranspose2d weight (Cin, Cout, kh, kw) -> spatially flipped HWIO.
    return jnp.transpose(w_t[:, :, ::-1, ::-1], (2, 3, 0, 1))


def _banded_rows(w_t, w_in):
    """Per-vertical-tap banded matrices for a stride-1 'same' ConvTranspose2d
    (padding = (k-1)/2) on an UNPADDED flat (row, W*Cin) layout:
        out[i, :] = sum_ky  rows[i + ky - pad, :] @ M[ky]   (out-of-range rows are 0)
    Returns (k, W*Cin, W*Cout)."""
    ci, co = int(w_t.shape[0]), int(w_t.shape[1])
    k = int(w_t.shape[2])
    pad = (k - 1) // 2
    wf = _flip_hwio(w_t)                                     # (k, k, Ci, Co)
    sel = np.zeros((k, w_in, w_in), np.float32)              # sel[kx, jx, j]
    for j in range(w_in):
        for kx in range(k):
            jx = j + kx - pad
            if 0 <= jx < w_in:
                sel[kx, jx, j] = 1.0
    m = jnp.einsum('axj,yacd->yxcjd', jnp.asarray(sel), wf)
    return m.reshape(k, w_in * ci, w_in * co)


def _proj_dense(w_t, s, stride):
    """Dense matrix for the Proj ConvT(k5,s1,p2): fc output (i,j,cin)-flat ->
    conv output laid out as `stride` rows per sample of (s*cout) flat, with rows
    r >= s all-zero (these become the inter-sample zero gap / bottom pad)."""
    ci, co = int(w_t.shape[0]), int(w_t.shape[1])
    k = int(w_t.shape[2])
    pad = 2
    wf = _flip_hwio(w_t)                                     # (k, k, Ci, Co)
    selv = np.zeros((s, stride, k), np.float32)              # selv[i, r, ky]
    selh = np.zeros((s, s, k), np.float32)                   # selh[j, o, kx]
    for i in range(s):
        for r in range(s):
            ky = i - r + pad
            if 0 <= ky < k:
                selv[i, r, ky] = 1.0
        for o in range(s):
            kx = i - o + pad
            if 0 <= kx < k:
                selh[i, o, kx] = 1.0
    m = jnp.einsum('iry,jox,yxcd->ijcrod', jnp.asarray(selv), jnp.asarray(selh), wf)
    return m.reshape(s * s * ci, stride * s * co)


def _stride2_phase_mats(w_t, w_in, col_mode):
    """ConvTranspose2d(k=4, s=2, p=1) phase matrices over UNPADDED flat rows.

        y[2m+rh, ...] = sum_dy  x_rows[m + rh + dy - 1, :] @ mats[rh][dy]
    (out-of-range x rows are zero).  Each matrix covers BOTH horizontal phases rw:
      'interleave': col = (2n+rw)*Cout + co ;  'concat': col = (rw*w_in+n)*Cout + co
    Returns mats[rh][dy] of shape (w_in*Cin, 2*w_in*Cout)."""
    ci, co = int(w_t.shape[0]), int(w_t.shape[1])
    mats = []
    for rh in range(2):
        per_dy = []
        for dy in range(2):
            m = jnp.zeros((w_in, ci, 2 * w_in, co), jnp.float32)
            for rw in range(2):
                for dx in range(2):
                    wsub = w_t[:, :, 3 - rh - 2 * dy, 3 - rw - 2 * dx]   # (Ci, Co)
                    sel = np.zeros((w_in, 2 * w_in), np.float32)          # [jx, pos]
                    for n in range(w_in):
                        jx = n + rw + dx - 1
                        if 0 <= jx < w_in:
                            cp = 2 * n + rw if col_mode == "interleave" else rw * w_in + n
                            sel[jx, cp] = 1.0
                    m = m + jnp.asarray(sel)[:, None, :, None] * wsub[None, :, None, :]
            per_dy.append(m.reshape(w_in * ci, 2 * w_in * co))
        mats.append(per_dy)
    return mats


def _prepare_operands(params, opt):
    ngf, coef, zs = opt["z3_ngf"], opt["coef"], opt["z3_size"]
    S = ngf
    STRIDE = S + 2
    # fc columns permuted from (c, i, j) to (i, j, c) flat order.
    fc_w = params["fc_w"].reshape(zs, coef, S, S).transpose(0, 2, 3, 1)
    fc_w = fc_w.reshape(zs, S * S * coef)
    fc_b = params["fc_b"].reshape(1, coef, S, S).transpose(0, 2, 3, 1)
    fc_b = fc_b.reshape(1, S * S * coef)

    w2d = _proj_dense(params["proj_conv_w"], S, STRIDE)        # (128, 1280)
    bw1 = _banded_rows(params["det_conv1_w"], S)               # (5, 128, 128)
    bw2 = _banded_rows(params["det_conv2_w"], S)               # (3, 128, 128)
    h1 = _stride2_phase_mats(params["head_conv1_w"], S, "interleave")
    h2 = _stride2_phase_mats(params["head_conv2_w"], 2 * S, "concat")
    return dict(
        fc_w=fc_w, fc_b=fc_b, w2d=w2d, bw1=bw1, bw2=bw2,
        # head-1: taps with identical LHS shift (rh+dy==1) are N-concatenated.
        m1a=h1[0][0],                                          # (128, 128)
        m1m=jnp.concatenate([h1[0][1], h1[1][0]], axis=1),     # (128, 256)
        m1b=h1[1][1],                                          # (128, 128)
        # head-2: matrices grouped per shared LHS slab (see kernel).
        h2a=h2[0][0],                                          # (128, 96)
        h2em=jnp.concatenate([h2[0][1], h2[1][0], h2[0][0]], axis=1),   # (128, 288)
        h2om=jnp.concatenate([h2[1][1], h2[0][1], h2[1][0]], axis=1),   # (128, 288)
        h2b=h2[1][1],                                          # (128, 96)
    )


# ---------------- the fused, batch-blocked Pallas kernel ----------------

def _make_kernel(opt, TB):
    S = opt["z3_ngf"]
    coef = opt["coef"]
    cc = S * coef
    WT = S * cc                 # trunk flat width       (128)
    W1 = 2 * S * S              # head-1 flat width      (128)
    W2 = 2 * (2 * S) * 3        # head-2 both-sw width   (96)
    STRIDE = S + 2              # rows per sample in the tall layout (10)
    NR = STRIDE * TB            # head-2 output rows per step
    R1 = NR - 2                 # trunk / head-1 output rows per step

    def kernel(z2_ref, fcw_ref, fcb_ref, w2d_ref, bw1_ref, bw2_ref,
               m1a_ref, m1m_ref, m1b_ref, h2a_ref, h2em_ref, h2om_ref, h2b_ref,
               o_ref, zp, d1p, dp, eb, ob):
        step = pl.program_id(0)

        # ---- zero only the border rows never rewritten below (gaps/interiors
        #      are fully overwritten every step, so steps stay independent) ----
        zt = jnp.zeros((2, WT), jnp.float32)
        zh = jnp.zeros((2, W1), jnp.float32)
        zh4 = jnp.zeros((4, W1), jnp.float32)
        zp[0:2, :] = zt
        d1p[0:2, :] = zt
        d1p[NR:NR + 2, :] = zt
        dp[0:2, :] = zt
        dp[NR:NR + 2, :] = zt
        ob[0:2, :] = zh
        eb[NR:NR + 4, :] = zh4
        ob[NR:NR + 4, :] = zh4

        # ---- Proj: fc + ReLU, then ConvT(k5,p2) + ReLU as one dense matmul ----
        zblk = z2_ref[pl.ds(step * TB, TB), :]                    # (TB, zs)
        h = jnp.dot(zblk, fcw_ref[...], preferred_element_type=jnp.float32)
        h = jnp.maximum(h + fcb_ref[...], 0.0)                    # (TB, S*S*coef)
        zfull = jnp.maximum(
            jnp.dot(h, w2d_ref[...], preferred_element_type=jnp.float32), 0.0)
        # dense matrix already emits STRIDE rows/sample (gap rows are zero), so a
        # single reshape + contiguous store fills interior, gaps and bottom pad.
        zp[2:2 + NR, :] = zfull.reshape(NR, WT)

        # validity mask for the tall layout: S data rows then 2 gap rows / sample
        rid = lax.broadcasted_iota(jnp.int32, (R1, 1), 0)
        valid = (rid % STRIDE) < S

        # ---- Deter.conv1: ConvT(cc->cc, k5, s1, p2) + ReLU --------------------
        acc = jnp.dot(zp[pl.ds(0, R1), :], bw1_ref[0],
                      preferred_element_type=jnp.float32)
        for ky in range(1, 5):
            acc = acc + jnp.dot(zp[pl.ds(ky, R1), :], bw1_ref[ky],
                                preferred_element_type=jnp.float32)
        d1p[2:2 + R1, :] = jnp.where(valid, jnp.maximum(acc, 0.0), 0.0)

        # ---- Deter.conv2: ConvT(cc->cc, k3, s1, p1) + ReLU + residual(z) ------
        acc = jnp.dot(d1p[pl.ds(1, R1), :], bw2_ref[0],
                      preferred_element_type=jnp.float32)
        for ky in range(1, 3):
            acc = acc + jnp.dot(d1p[pl.ds(1 + ky, R1), :], bw2_ref[ky],
                                preferred_element_type=jnp.float32)
        d = jnp.where(valid,
                      jnp.maximum(acc, 0.0) + zp[pl.ds(2, R1), :], 0.0)
        dp[2:2 + R1, :] = d

        # ---- Head conv1: ConvT(cc->ngf, k4, s2, p1) + ReLU --------------------
        # Row-phase decomposed; both column phases live in one RHS; the two taps
        # with identical LHS shift are N-concatenated -> 3 matmuls total.
        p0 = jnp.dot(dp[pl.ds(1, R1), :], m1a_ref[...],
                     preferred_element_type=jnp.float32)          # (R1, 128)
        pm = jnp.dot(dp[pl.ds(2, R1), :], m1m_ref[...],
                     preferred_element_type=jnp.float32)          # (R1, 256)
        p2 = jnp.dot(dp[pl.ds(3, R1), :], m1b_ref[...],
                     preferred_element_type=jnp.float32)          # (R1, 128)
        eb[2:2 + R1, :] = jnp.where(valid, jnp.maximum(p0 + pm[:, :W1], 0.0), 0.0)
        ob[2:2 + R1, :] = jnp.where(valid, jnp.maximum(pm[:, W1:] + p2, 0.0), 0.0)

        # ---- Head conv2: ConvT(ngf->3, k4, s2, p1) + tanh ---------------------
        # Decomposed over output-row parity too, so it reads the even/odd row
        # buffers directly; shared-LHS taps are N-concatenated -> 4 matmuls.
        do1 = jnp.dot(ob[pl.ds(1, NR), :], h2a_ref[...],
                      preferred_element_type=jnp.float32)         # (NR, 96)
        de2 = jnp.dot(eb[pl.ds(2, NR), :], h2em_ref[...],
                      preferred_element_type=jnp.float32)         # (NR, 288)
        do2 = jnp.dot(ob[pl.ds(2, NR), :], h2om_ref[...],
                      preferred_element_type=jnp.float32)         # (NR, 288)
        de3 = jnp.dot(eb[pl.ds(3, NR), :], h2b_ref[...],
                      preferred_element_type=jnp.float32)         # (NR, 96)
        rp0 = do1 + de2[:, 0 * W2:1 * W2]
        rp1 = de2[:, 1 * W2:2 * W2] + do2[:, 0 * W2:1 * W2]
        rp2 = de2[:, 2 * W2:3 * W2] + do2[:, 1 * W2:2 * W2]
        rp3 = do2[:, 2 * W2:3 * W2] + de3
        o_ref[0] = jnp.tanh(jnp.concatenate([rp0, rp1, rp2, rp3], axis=1))

    return kernel


def _pick_tb(B):
    # Target M = STRIDE*TB ~ 128-160 (fills the MXU height on v5e; reasonable on
    # v6e/v7x) while keeping >= 2 grid steps when B >= 2 so megacore / v7x's two
    # TensorCores both get work under dimension_semantics=("parallel",).
    tb = min(16, B)
    if B >= 2:
        tb = min(tb, -(-B // 2))
    return max(tb, 1)


# ---------------- Generator_Conv forward (single pallas_call) ----------------

def generator_conv_forward(params, z2, opt, block_batch=None):
    ngf, coef, zs = opt["z3_ngf"], opt["coef"], opt["z3_size"]
    S = ngf
    cc = S * coef
    WT = S * cc
    W1 = 2 * S * S
    W2 = 2 * (2 * S) * 3
    STRIDE = S + 2
    B = z2.shape[0]

    TB = block_batch if block_batch is not None else _pick_tb(B)
    nsteps = -(-B // TB)
    Bp = nsteps * TB
    if Bp != B:
        z2 = jnp.concatenate([z2, jnp.zeros((Bp - B, zs), z2.dtype)], axis=0)

    NR = STRIDE * TB
    TOTT = NR + 2      # trunk buffers: 2 top-pad rows + TB*(S data + 2 gap) rows
    TOTE = NR + 4      # even/odd head-1 row buffers (a little extra bottom pad)

    ops = _prepare_operands(params, opt)
    kernel = _make_kernel(opt, TB)

    def cspec(shape):
        nd = len(shape)
        return pl.BlockSpec(shape, lambda s, nd=nd: (0,) * nd)

    n_fc = S * S * coef
    raw = pl.pallas_call(
        kernel,
        out_shape=jax.ShapeDtypeStruct((nsteps, NR, 4 * W2), jnp.float32),
        grid=(nsteps,),
        in_specs=[
            cspec((Bp, zs)),                 # z2 (whole array; sliced in-kernel)
            cspec((zs, n_fc)),               # fc_w  (columns in (i,j,c) order)
            cspec((1, n_fc)),                # fc_b
            cspec((n_fc, STRIDE * WT)),      # proj dense matrix
            cspec((5, WT, WT)),              # det1 banded taps
            cspec((3, WT, WT)),              # det2 banded taps
            cspec((WT, W1)),                 # head-1 tap (rh=0,dy=0)
            cspec((WT, 2 * W1)),             # head-1 paired middle taps
            cspec((WT, W1)),                 # head-1 tap (rh=1,dy=1)
            cspec((W1, W2)),                 # head-2 tap group A
            cspec((W1, 3 * W2)),             # head-2 tap group (even rows)
            cspec((W1, 3 * W2)),             # head-2 tap group (odd rows)
            cspec((W1, W2)),                 # head-2 tap group B
        ],
        out_specs=pl.BlockSpec((1, NR, 4 * W2), lambda s: (s, 0, 0)),
        scratch_shapes=[
            pltpu.VMEM((TOTT, WT), jnp.float32),   # zp  : proj output rows
            pltpu.VMEM((TOTT, WT), jnp.float32),   # d1p : deter.conv1 output rows
            pltpu.VMEM((TOTT, WT), jnp.float32),   # dp  : deter output rows
            pltpu.VMEM((TOTE, W1), jnp.float32),   # eb  : head-1 even output rows
            pltpu.VMEM((TOTE, W1), jnp.float32),   # ob  : head-1 odd output rows
        ],
        compiler_params=pltpu.CompilerParams(dimension_semantics=("parallel",)),
    )(z2, ops["fc_w"], ops["fc_b"], ops["w2d"], ops["bw1"], ops["bw2"],
      ops["m1a"], ops["m1m"], ops["m1b"],
      ops["h2a"], ops["h2em"], ops["h2om"], ops["h2b"])

    # raw[step, STRIDE*b + q, rp*96 + sw*48 + n*3 + co] = x[b, co, 4q+rp, 2n+sw]
    rows = raw.reshape(Bp, STRIDE, 4 * W2)[:B, :S]            # (B, S, 384)
    rows = rows.reshape(B, S, 4, 2, 2 * S, 3)                 # (b, q, rp, sw, n, co)
    out = rows.transpose(0, 5, 1, 2, 4, 3).reshape(B, 3, 4 * S, 4 * S)
    return out


# ---------------- pure-JAX reference (NCHW, lax conv) ----------------

def _ref_conv_transpose(x_nchw, w_t, stride, padding):
    k = w_t.shape[2]
    w = jnp.transpose(w_t[:, :, ::-1, ::-1], (1, 0, 2, 3))        # OIHW
    return lax.conv_general_dilated(
        x_nchw, w, window_strides=(1, 1),
        padding=[(k - 1 - padding, k - 1 - padding)] * 2,
        lhs_dilation=(stride, stride),
        dimension_numbers=("NCHW", "OIHW", "NCHW"))


def generator_conv_reference(params, z2, opt):
    ngf, coef = opt["z3_ngf"], opt["coef"]
    h = jnp.maximum(z2 @ params["fc_w"] + params["fc_b"], 0.0)
    h = h.reshape(-1, coef, ngf, ngf)
    z = jnp.maximum(_ref_conv_transpose(h, params["proj_conv_w"], 1, 2), 0.0)
    d = jnp.maximum(_ref_conv_transpose(z, params["det_conv1_w"], 1, 2), 0.0)
    d = jnp.maximum(_ref_conv_transpose(d, params["det_conv2_w"], 1, 1), 0.0) + z
    x = jnp.maximum(_ref_conv_transpose(d, params["head_conv1_w"], 2, 1), 0.0)
    x = jnp.tanh(_ref_conv_transpose(x, params["head_conv2_w"], 2, 1))
    return x


if __name__ == "__main__":
    opt = {"z3_size": 16, "z3_ngf": 8, "coef": 2}
    B = 2
    ngf, coef, zs = opt["z3_ngf"], opt["coef"], opt["z3_size"]
    cc = ngf * coef

    key = jax.random.PRNGKey(0)
    keys = jax.random.split(key, 8)
    params = {
        # nn.Linear(z3_size, ngf*ngf*coef): stored as (in, out) + (1, out)
        "fc_w": jax.random.normal(keys[0], (zs, ngf * ngf * coef), jnp.float32) * 0.1,
        "fc_b": jax.random.normal(keys[1], (1, ngf * ngf * coef), jnp.float32) * 0.1,
        # ConvTranspose2d weights in PyTorch layout (Cin, Cout, kh, kw), bias=False
        "proj_conv_w": jax.random.normal(keys[2], (coef, cc, 5, 5), jnp.float32) * 0.1,
        "det_conv1_w": jax.random.normal(keys[3], (cc, cc, 5, 5), jnp.float32) * 0.05,
        "det_conv2_w": jax.random.normal(keys[4], (cc, cc, 3, 3), jnp.float32) * 0.05,
        "head_conv1_w": jax.random.normal(keys[5], (cc, ngf, 4, 4), jnp.float32) * 0.1,
        "head_conv2_w": jax.random.normal(keys[6], (ngf, 3, 4, 4), jnp.float32) * 0.1,
    }
    z2 = jax.random.normal(keys[7], (B, zs), jnp.float32)

    fwd = jax.jit(lambda p, z: generator_conv_forward(p, z, opt))
    out = jax.block_until_ready(fwd(params, z2))
    ref = jax.block_until_ready(generator_conv_reference(params, z2, opt))

    assert out.shape == (B, 3, 4 * ngf, 4 * ngf), out.shape
    err = float(jnp.max(jnp.abs(out - ref)))
    assert jnp.allclose(out, ref, atol=1e-3, rtol=1e-3), err
    print("KERNEL_OK")
</pallas_src>

<mosaic_0001>
module attributes {stable_mosaic.version = 11 : i64} {
  func.func @kernel(%arg0: i32, %arg1: memref<2x16xf32, #tpu.memory_space<vmem>>, %arg2: memref<16x128xf32, #tpu.memory_space<vmem>>, %arg3: memref<1x128xf32, #tpu.memory_space<vmem>>, %arg4: memref<128x1280xf32, #tpu.memory_space<vmem>>, %arg5: memref<5x128x128xf32, #tpu.memory_space<vmem>>, %arg6: memref<3x128x128xf32, #tpu.memory_space<vmem>>, %arg7: memref<128x128xf32, #tpu.memory_space<vmem>>, %arg8: memref<128x256xf32, #tpu.memory_space<vmem>>, %arg9: memref<128x128xf32, #tpu.memory_space<vmem>>, %arg10: memref<128x96xf32, #tpu.memory_space<vmem>>, %arg11: memref<128x288xf32, #tpu.memory_space<vmem>>, %arg12: memref<128x288xf32, #tpu.memory_space<vmem>>, %arg13: memref<128x96xf32, #tpu.memory_space<vmem>>, %arg14: memref<1x10x384xf32, #tpu.memory_space<vmem>>, %arg15: memref<12x128xf32, #tpu.memory_space<vmem>>, %arg16: memref<12x128xf32, #tpu.memory_space<vmem>>, %arg17: memref<12x128xf32, #tpu.memory_space<vmem>>, %arg18: memref<14x128xf32, #tpu.memory_space<vmem>>, %arg19: memref<14x128xf32, #tpu.memory_space<vmem>>) attributes {dimension_semantics = [#tpu.dimension_semantics<parallel>], iteration_bounds = array<i64: 2>, scalar_prefetch = 0 : i64, scratch_operands = 5 : i64, tpu.core_type = #tpu.core_type<tc>, window_params = [{pipeline_mode = #tpu.pipeline_mode<synchronous>, transform_indices = @transform_0, window_bounds = array<i64: 2, 16>}, {pipeline_mode = #tpu.pipeline_mode<synchronous>, transform_indices = @transform_1, window_bounds = array<i64: 16, 128>}, {pipeline_mode = #tpu.pipeline_mode<synchronous>, transform_indices = @transform_2, window_bounds = array<i64: 1, 128>}, {pipeline_mode = #tpu.pipeline_mode<synchronous>, transform_indices = @transform_3, window_bounds = array<i64: 128, 1280>}, {pipeline_mode = #tpu.pipeline_mode<synchronous>, transform_indices = @transform_4, window_bounds = array<i64: 5, 128, 128>}, {pipeline_mode = #tpu.pipeline_mode<synchronous>, transform_indices = @transform_5, window_bounds = array<i64: 3, 128, 128>}, {pipeline_mode = #tpu.pipeline_mode<synchronous>, transform_indices = @transform_6, window_bounds = array<i64: 128, 128>}, {pipeline_mode = #tpu.pipeline_mode<synchronous>, transform_indices = @transform_7, window_bounds = array<i64: 128, 256>}, {pipeline_mode = #tpu.pipeline_mode<synchronous>, transform_indices = @transform_8, window_bounds = array<i64: 128, 128>}, {pipeline_mode = #tpu.pipeline_mode<synchronous>, transform_indices = @transform_9, window_bounds = array<i64: 128, 96>}, {pipeline_mode = #tpu.pipeline_mode<synchronous>, transform_indices = @transform_10, window_bounds = array<i64: 128, 288>}, {pipeline_mode = #tpu.pipeline_mode<synchronous>, transform_indices = @transform_11, window_bounds = array<i64: 128, 288>}, {pipeline_mode = #tpu.pipeline_mode<synchronous>, transform_indices = @transform_12, window_bounds = array<i64: 128, 96>}, {transform_indices = @transform_13, window_bounds = array<i64: 1, 10, 384>}]} {
    %cst = arith.constant 0.000000e+00 : f32
    %0 = vector.broadcast %cst : f32 to vector<2x128xf32>
    %cst_0 = arith.constant 0.000000e+00 : f32
    %1 = vector.broadcast %cst_0 : f32 to vector<2x128xf32>
    %cst_1 = arith.constant 0.000000e+00 : f32
    %2 = vector.broadcast %cst_1 : f32 to vector<4x128xf32>
    %c0 = arith.constant 0 : index
    %c0_2 = arith.constant 0 : index
    %3 = vector.load %arg15[%c0, %c0_2] : memref<12x128xf32, #tpu.memory_space<vmem>>, vector<2x128xf32>
    tpu.vector_store %arg15[%c0, %c0_2], %0 {strides = array<i32>} : memref<12x128xf32, #tpu.memory_space<vmem>>, vector<2x128xf32>,
    %c0_3 = arith.constant 0 : index
    %c0_4 = arith.constant 0 : index
    %4 = vector.load %arg16[%c0_3, %c0_4] : memref<12x128xf32, #tpu.memory_space<vmem>>, vector<2x128xf32>
    tpu.vector_store %arg16[%c0_3, %c0_4], %0 {strides = array<i32>} : memref<12x128xf32, #tpu.memory_space<vmem>>, vector<2x128xf32>,
    %c10 = arith.constant 10 : index
    %c0_5 = arith.constant 0 : index
    %5 = vector.load %arg16[%c10, %c0_5] : memref<12x128xf32, #tpu.memory_space<vmem>>, vector<2x128xf32>
    tpu.vector_store %arg16[%c10, %c0_5], %0 {strides = array<i32>} : memref<12x128xf32, #tpu.memory_space<vmem>>, vector<2x128xf32>,
    %c0_6 = arith.constant 0 : index
    %c0_7 = arith.constant 0 : index
    %6 = vector.load %arg17[%c0_6, %c0_7] : memref<12x128xf32, #tpu.memory_space<vmem>>, vector<2x128xf32>
    tpu.vector_store %arg17[%c0_6, %c0_7], %0 {strides = array<i32>} : memref<12x128xf32, #tpu.memory_space<vmem>>, vector<2x128xf32>,
    %c10_8 = arith.constant 10 : index
    %c0_9 = arith.constant 0 : index
    %7 = vector.load %arg17[%c10_8, %c0_9] : memref<12x128xf32, #tpu.memory_space<vmem>>, vector<2x128xf32>
    tpu.vector_store %arg17[%c10_8, %c0_9], %0 {strides = array<i32>} : memref<12x128xf32, #tpu.memory_space<vmem>>, vector<2x128xf32>,
    %c0_10 = arith.constant 0 : index
    %c0_11 = arith.constant 0 : index
    %8 = vector.load %arg19[%c0_10, %c0_11] : memref<14x128xf32, #tpu.memory_space<vmem>>, vector<2x128xf32>
    tpu.vector_store %arg19[%c0_10, %c0_11], %1 {strides = array<i32>} : memref<14x128xf32, #tpu.memory_space<vmem>>, vector<2x128xf32>,
    %c10_12 = arith.constant 10 : index
    %c0_13 = arith.constant 0 : index
    %9 = vector.load %arg18[%c10_12, %c0_13] : memref<14x128xf32, #tpu.memory_space<vmem>>, vector<4x128xf32>
    tpu.vector_store %arg18[%c10_12, %c0_13], %2 {strides = array<i32>} : memref<14x128xf32, #tpu.memory_space<vmem>>, vector<4x128xf32>,
    %c10_14 = arith.constant 10 : index
    %c0_15 = arith.constant 0 : index
    %10 = vector.load %arg19[%c10_14, %c0_15] : memref<14x128xf32, #tpu.memory_space<vmem>>, vector<4x128xf32>
    tpu.vector_store %arg19[%c10_14, %c0_15], %2 {strides = array<i32>} : memref<14x128xf32, #tpu.memory_space<vmem>>, vector<4x128xf32>,
    %c1_i32 = arith.constant 1 : i32
    %11 = arith.muli %arg0, %c1_i32 : i32
    %12 = arith.index_cast %11 : i32 to index
    %c0_16 = arith.constant 0 : index
    %13 = vector.load %arg1[%12, %c0_16] : memref<2x16xf32, #tpu.memory_space<vmem>>, vector<1x16xf32>
    %c0_17 = arith.constant 0 : index
    %c0_18 = arith.constant 0 : index
    %14 = vector.load %arg2[%c0_17, %c0_18] : memref<16x128xf32, #tpu.memory_space<vmem>>, vector<16x128xf32>
    %cst_19 = arith.constant dense<0.000000e+00> : vector<1x128xf32>
    %15 = tpu.matmul %13, %14, %cst_19 {dimension_numbers = #tpu.dot_dimension_numbers<[1], [0], [0], [1], [0, 0, 1, 1], [], []>} : vector<1x16xf32>, vector<16x128xf32>, vector<1x128xf32> -> vector<1x128xf32>
    %c0_20 = arith.constant 0 : index
    %c0_21 = arith.constant 0 : index
    %16 = vector.load %arg3[%c0_20, %c0_21] : memref<1x128xf32, #tpu.memory_space<vmem>>, vector<1x128xf32>
    %17 = arith.addf %15, %16 : vector<1x128xf32>
    %cst_22 = arith.constant 0.000000e+00 : f32
    %18 = vector.broadcast %cst_22 : f32 to vector<1x128xf32>
    %19 = arith.maximumf %17, %18 : vector<1x128xf32>
    %c0_23 = arith.constant 0 : index
    %c0_24 = arith.constant 0 : index
    %20 = vector.load %arg4[%c0_23, %c0_24] : memref<128x1280xf32, #tpu.memory_space<vmem>>, vector<128x1280xf32>
    %cst_25 = arith.constant dense<0.000000e+00> : vector<1x1280xf32>
    %21 = tpu.matmul %19, %20, %cst_25 {dimension_numbers = #tpu.dot_dimension_numbers<[1], [0], [0], [1], [0, 0, 1, 1], [], []>} : vector<1x128xf32>, vector<128x1280xf32>, vector<1x1280xf32> -> vector<1x1280xf32>
    %cst_26 = arith.constant 0.000000e+00 : f32
    %22 = vector.broadcast %cst_26 : f32 to vector<1x1280xf32>
    %23 = arith.maximumf %21, %22 : vector<1x1280xf32>
    %24 = vector.shape_cast %23 : vector<1x1280xf32> to vector<10x128xf32>
    %c2 = arith.constant 2 : index
    %c0_27 = arith.constant 0 : index
    %25 = vector.load %arg15[%c2, %c0_27] : memref<12x128xf32, #tpu.memory_space<vmem>>, vector<10x128xf32>
    tpu.vector_store %arg15[%c2, %c0_27], %24 {strides = array<i32>} : memref<12x128xf32, #tpu.memory_space<vmem>>, vector<10x128xf32>,
    %26 = tpu.iota {dimensions = array<i32: 0>} : vector<8x1xi32>
    %c10_i32 = arith.constant 10 : i32
    %c0_i32 = arith.constant 0 : i32
    %27 = arith.cmpi eq, %c10_i32, %c0_i32 : i32
    %c1_i32_28 = arith.constant 1 : i32
    %28 = arith.select %27, %c1_i32_28, %c10_i32 : i32
    %29 = vector.broadcast %28 : i32 to vector<8x1xi32>
    %30 = arith.remsi %26, %29 : vector<8x1xi32>
    %c0_i32_29 = arith.constant 0 : i32
    %31 = vector.broadcast %c0_i32_29 : i32 to vector<8x1xi32>
    %32 = arith.cmpi ne, %30, %31 : vector<8x1xi32>
    %c0_i32_30 = arith.constant 0 : i32
    %33 = vector.broadcast %c0_i32_30 : i32 to vector<8x1xi32>
    %34 = arith.cmpi slt, %30, %33 : vector<8x1xi32>
    %c0_i32_31 = arith.constant 0 : i32
    %35 = arith.cmpi slt, %28, %c0_i32_31 : i32
    %36 = vector.broadcast %35 : i1 to vector<8x1xi1>
    %37 = vector.broadcast %36 : vector<8x1xi1> to vector<8x1xi1>
    %38 = arith.xori %34, %37 : vector<8x1xi1>
    %39 = arith.andi %38, %32 : vector<8x1xi1>
    %40 = vector.broadcast %28 : i32 to vector<8x1xi32>
    %41 = arith.addi %30, %40 : vector<8x1xi32>
    %42 = arith.select %39, %41, %30 : vector<8x1xi1>, vector<8x1xi32>
    %c8_i32 = arith.constant 8 : i32
    %43 = vector.broadcast %c8_i32 : i32 to vector<8x1xi32>
    %44 = arith.cmpi slt, %42, %43 : vector<8x1xi32>
    %c0_32 = arith.constant 0 : index
    %c0_33 = arith.constant 0 : index
    %45 = vector.load %arg15[%c0_32, %c0_33] : memref<12x128xf32, #tpu.memory_space<vmem>>, vector<8x128xf32>
    %c0_34 = arith.constant 0 : index
    %c0_35 = arith.constant 0 : index
    %c0_36 = arith.constant 0 : index
    %46 = vector.load %arg5[%c0_34, %c0_35, %c0_36] : memref<5x128x128xf32, #tpu.memory_space<vmem>>, vector<1x128x128xf32>
    %47 = vector.shape_cast %46 : vector<1x128x128xf32> to vector<128x128xf32>
    %cst_37 = arith.constant dense<0.000000e+00> : vector<8x128xf32>
    %48 = tpu.matmul %45, %47, %cst_37 {dimension_numbers = #tpu.dot_dimension_numbers<[1], [0], [0], [1], [0, 0, 1, 1], [], []>} : vector<8x128xf32>, vector<128x128xf32>, vector<8x128xf32> -> vector<8x128xf32>
    %c1 = arith.constant 1 : index
    %c0_38 = arith.constant 0 : index
    %49 = vector.load %arg15[%c1, %c0_38] : memref<12x128xf32, #tpu.memory_space<vmem>>, vector<8x128xf32>
    %c1_39 = arith.constant 1 : index
    %c0_40 = arith.constant 0 : index
    %c0_41 = arith.constant 0 : index
    %50 = vector.load %arg5[%c1_39, %c0_40, %c0_41] : memref<5x128x128xf32, #tpu.memory_space<vmem>>, vector<1x128x128xf32>
    %51 = vector.shape_cast %50 : vector<1x128x128xf32> to vector<128x128xf32>
    %cst_42 = arith.constant dense<0.000000e+00> : vector<8x128xf32>
    %52 = tpu.matmul %49, %51, %cst_42 {dimension_numbers = #tpu.dot_dimension_numbers<[1], [0], [0], [1], [0, 0, 1, 1], [], []>} : vector<8x128xf32>, vector<128x128xf32>, vector<8x128xf32> -> vector<8x128xf32>
    %53 = arith.addf %48, %52 : vector<8x128xf32>
    %c2_43 = arith.constant 2 : index
    %c0_44 = arith.constant 0 : index
    %54 = vector.load %arg15[%c2_43, %c0_44] : memref<12x128xf32, #tpu.memory_space<vmem>>, vector<8x128xf32>
    %c2_45 = arith.constant 2 : index
    %c0_46 = arith.constant 0 : index
    %c0_47 = arith.constant 0 : index
    %55 = vector.load %arg5[%c2_45, %c0_46, %c0_47] : memref<5x128x128xf32, #tpu.memory_space<vmem>>, vector<1x128x128xf32>
    %56 = vector.shape_cast %55 : vector<1x128x128xf32> to vector<128x128xf32>
    %cst_48 = arith.constant dense<0.000000e+00> : vector<8x128xf32>
    %57 = tpu.matmul %54, %56, %cst_48 {dimension_numbers = #tpu.dot_dimension_numbers<[1], [0], [0], [1], [0, 0, 1, 1], [], []>} : vector<8x128xf32>, vector<128x128xf32>, vector<8x128xf32> -> vector<8x128xf32>
    %58 = arith.addf %53, %57 : vector<8x128xf32>
    %c3 = arith.constant 3 : index
    %c0_49 = arith.constant 0 : index
    %59 = vector.load %arg15[%c3, %c0_49] : memref<12x128xf32, #tpu.memory_space<vmem>>, vector<8x128xf32>
    %c3_50 = arith.constant 3 : index
    %c0_51 = arith.constant 0 : index
    %c0_52 = arith.constant 0 : index
    %60 = vector.load %arg5[%c3_50, %c0_51, %c0_52] : memref<5x128x128xf32, #tpu.memory_space<vmem>>, vector<1x128x128xf32>
    %61 = vector.shape_cast %60 : vector<1x128x128xf32> to vector<128x128xf32>
    %cst_53 = arith.constant dense<0.000000e+00> : vector<8x128xf32>
    %62 = tpu.matmul %59, %61, %cst_53 {dimension_numbers = #tpu.dot_dimension_numbers<[1], [0], [0], [1], [0, 0, 1, 1], [], []>} : vector<8x128xf32>, vector<128x128xf32>, vector<8x128xf32> -> vector<8x128xf32>
    %63 = arith.addf %58, %62 : vector<8x128xf32>
    %c4 = arith.constant 4 : index
    %c0_54 = arith.constant 0 : index
    %64 = vector.load %arg15[%c4, %c0_54] : memref<12x128xf32, #tpu.memory_space<vmem>>, vector<8x128xf32>
    %c4_55 = arith.constant 4 : index
    %c0_56 = arith.constant 0 : index
    %c0_57 = arith.constant 0 : index
    %65 = vector.load %arg5[%c4_55, %c0_56, %c0_57] : memref<5x128x128xf32, #tpu.memory_space<vmem>>, vector<1x128x128xf32>
    %66 = vector.shape_cast %65 : vector<1x128x128xf32> to vector<128x128xf32>
    %cst_58 = arith.constant dense<0.000000e+00> : vector<8x128xf32>
    %67 = tpu.matmul %64, %66, %cst_58 {dimension_numbers = #tpu.dot_dimension_numbers<[1], [0], [0], [1], [0, 0, 1, 1], [], []>} : vector<8x128xf32>, vector<128x128xf32>, vector<8x128xf32> -> vector<8x128xf32>
    %68 = arith.addf %63, %67 : vector<8x128xf32>
    %cst_59 = arith.constant 0.000000e+00 : f32
    %69 = vector.broadcast %cst_59 : f32 to vector<8x128xf32>
    %70 = arith.maximumf %68, %69 : vector<8x128xf32>
    %cst_60 = arith.constant 0.000000e+00 : f32
    %71 = vector.shape_cast %44 : vector<8x1xi1> to vector<8x1xi1>
    %72 = vector.broadcast %71 : vector<8x1xi1> to vector<8x128xi1>
    %73 = vector.broadcast %cst_60 : f32 to vector<8x128xf32>
    %74 = arith.select %72, %70, %73 : vector<8x128xi1>, vector<8x128xf32>
    %c2_61 = arith.constant 2 : index
    %c0_62 = arith.constant 0 : index
    %75 = vector.load %arg16[%c2_61, %c0_62] : memref<12x128xf32, #tpu.memory_space<vmem>>, vector<8x128xf32>
    tpu.vector_store %arg16[%c2_61, %c0_62], %74 {strides = array<i32>} : memref<12x128xf32, #tpu.memory_space<vmem>>, vector<8x128xf32>,
    %c1_63 = arith.constant 1 : index
    %c0_64 = arith.constant 0 : index
    %76 = vector.load %arg16[%c1_63, %c0_64] : memref<12x128xf32, #tpu.memory_space<vmem>>, vector<8x128xf32>
    %c0_65 = arith.constant 0 : index
    %c0_66 = arith.constant 0 : index
    %c0_67 = arith.constant 0 : index
    %77 = vector.load %arg6[%c0_65, %c0_66, %c0_67] : memref<3x128x128xf32, #tpu.memory_space<vmem>>, vector<1x128x128xf32>
    %78 = vector.shape_cast %77 : vector<1x128x128xf32> to vector<128x128xf32>
    %cst_68 = arith.constant dense<0.000000e+00> : vector<8x128xf32>
    %79 = tpu.matmul %76, %78, %cst_68 {dimension_numbers = #tpu.dot_dimension_numbers<[1], [0], [0], [1], [0, 0, 1, 1], [], []>} : vector<8x128xf32>, vector<128x128xf32>, vector<8x128xf32> -> vector<8x128xf32>
    %c2_69 = arith.constant 2 : index
    %c0_70 = arith.constant 0 : index
    %80 = vector.load %arg16[%c2_69, %c0_70] : memref<12x128xf32, #tpu.memory_space<vmem>>, vector<8x128xf32>
    %c1_71 = arith.constant 1 : index
    %c0_72 = arith.constant 0 : index
    %c0_73 = arith.constant 0 : index
    %81 = vector.load %arg6[%c1_71, %c0_72, %c0_73] : memref<3x128x128xf32, #tpu.memory_space<vmem>>, vector<1x128x128xf32>
    %82 = vector.shape_cast %81 : vector<1x128x128xf32> to vector<128x128xf32>
    %cst_74 = arith.constant dense<0.000000e+00> : vector<8x128xf32>
    %83 = tpu.matmul %80, %82, %cst_74 {dimension_numbers = #tpu.dot_dimension_numbers<[1], [0], [0], [1], [0, 0, 1, 1], [], []>} : vector<8x128xf32>, vector<128x128xf32>, vector<8x128xf32> -> vector<8x128xf32>
    %84 = arith.addf %79, %83 : vector<8x128xf32>
    %c3_75 = arith.constant 3 : index
    %c0_76 = arith.constant 0 : index
    %85 = vector.load %arg16[%c3_75, %c0_76] : memref<12x128xf32, #tpu.memory_space<vmem>>, vector<8x128xf32>
    %c2_77 = arith.constant 2 : index
    %c0_78 = arith.constant 0 : index
    %c0_79 = arith.constant 0 : index
    %86 = vector.load %arg6[%c2_77, %c0_78, %c0_79] : memref<3x128x128xf32, #tpu.memory_space<vmem>>, vector<1x128x128xf32>
    %87 = vector.shape_cast %86 : vector<1x128x128xf32> to vector<128x128xf32>
    %cst_80 = arith.constant dense<0.000000e+00> : vector<8x128xf32>
    %88 = tpu.matmul %85, %87, %cst_80 {dimension_numbers = #tpu.dot_dimension_numbers<[1], [0], [0], [1], [0, 0, 1, 1], [], []>} : vector<8x128xf32>, vector<128x128xf32>, vector<8x128xf32> -> vector<8x128xf32>
    %89 = arith.addf %84, %88 : vector<8x128xf32>
    %cst_81 = arith.constant 0.000000e+00 : f32
    %90 = vector.broadcast %cst_81 : f32 to vector<8x128xf32>
    %91 = arith.maximumf %89, %90 : vector<8x128xf32>
    %c2_82 = arith.constant 2 : index
    %c0_83 = arith.constant 0 : index
    %92 = vector.load %arg15[%c2_82, %c0_83] : memref<12x128xf32, #tpu.memory_space<vmem>>, vector<8x128xf32>
    %93 = arith.addf %91, %92 : vector<8x128xf32>
    %cst_84 = arith.constant 0.000000e+00 : f32
    %94 = vector.shape_cast %44 : vector<8x1xi1> to vector<8x1xi1>
    %95 = vector.broadcast %94 : vector<8x1xi1> to vector<8x128xi1>
    %96 = vector.broadcast %cst_84 : f32 to vector<8x128xf32>
    %97 = arith.select %95, %93, %96 : vector<8x128xi1>, vector<8x128xf32>
    %c2_85 = arith.constant 2 : index
    %c0_86 = arith.constant 0 : index
    %98 = vector.load %arg17[%c2_85, %c0_86] : memref<12x128xf32, #tpu.memory_space<vmem>>, vector<8x128xf32>
    tpu.vector_store %arg17[%c2_85, %c0_86], %97 {strides = array<i32>} : memref<12x128xf32, #tpu.memory_space<vmem>>, vector<8x128xf32>,
    %c1_87 = arith.constant 1 : index
    %c0_88 = arith.constant 0 : index
    %99 = vector.load %arg17[%c1_87, %c0_88] : memref<12x128xf32, #tpu.memory_space<vmem>>, vector<8x128xf32>
    %c0_89 = arith.constant 0 : index
    %c0_90 = arith.constant 0 : index
    %100 = vector.load %arg7[%c0_89, %c0_90] : memref<128x128xf32, #tpu.memory_space<vmem>>, vector<128x128xf32>
    %cst_91 = arith.constant dense<0.000000e+00> : vector<8x128xf32>
    %101 = tpu.matmul %99, %100, %cst_91 {dimension_numbers = #tpu.dot_dimension_numbers<[1], [0], [0], [1], [0, 0, 1, 1], [], []>} : vector<8x128xf32>, vector<128x128xf32>, vector<8x128xf32> -> vector<8x128xf32>
    %c2_92 = arith.constant 2 : index
    %c0_93 = arith.constant 0 : index
    %102 = vector.load %arg17[%c2_92, %c0_93] : memref<12x128xf32, #tpu.memory_space<vmem>>, vector<8x128xf32>
    %c0_94 = arith.constant 0 : index
    %c0_95 = arith.constant 0 : index
    %103 = vector.load %arg8[%c0_94, %c0_95] : memref<128x256xf32, #tpu.memory_space<vmem>>, vector<128x256xf32>
    %cst_96 = arith.constant dense<0.000000e+00> : vector<8x256xf32>
    %104 = tpu.matmul %102, %103, %cst_96 {dimension_numbers = #tpu.dot_dimension_numbers<[1], [0], [0], [1], [0, 0, 1, 1], [], []>} : vector<8x128xf32>, vector<128x256xf32>, vector<8x256xf32> -> vector<8x256xf32>
    %c3_97 = arith.constant 3 : index
    %c0_98 = arith.constant 0 : index
    %105 = vector.load %arg17[%c3_97, %c0_98] : memref<12x128xf32, #tpu.memory_space<vmem>>, vector<8x128xf32>
    %c0_99 = arith.constant 0 : index
    %c0_100 = arith.constant 0 : index
    %106 = vector.load %arg9[%c0_99, %c0_100] : memref<128x128xf32, #tpu.memory_space<vmem>>, vector<128x128xf32>
    %cst_101 = arith.constant dense<0.000000e+00> : vector<8x128xf32>
    %107 = tpu.matmul %105, %106, %cst_101 {dimension_numbers = #tpu.dot_dimension_numbers<[1], [0], [0], [1], [0, 0, 1, 1], [], []>} : vector<8x128xf32>, vector<128x128xf32>, vector<8x128xf32> -> vector<8x128xf32>
    %108 = vector.extract_strided_slice %104 {offsets = [0, 0], sizes = [8, 128], strides = [1, 1]} : vector<8x256xf32> to vector<8x128xf32>
    %109 = arith.addf %101, %108 : vector<8x128xf32>
    %cst_102 = arith.constant 0.000000e+00 : f32
    %110 = vector.broadcast %cst_102 : f32 to vector<8x128xf32>
    %111 = arith.maximumf %109, %110 : vector<8x128xf32>
    %cst_103 = arith.constant 0.000000e+00 : f32
    %112 = vector.shape_cast %44 : vector<8x1xi1> to vector<8x1xi1>
    %113 = vector.broadcast %112 : vector<8x1xi1> to vector<8x128xi1>
    %114 = vector.broadcast %cst_103 : f32 to vector<8x128xf32>
    %115 = arith.select %113, %111, %114 : vector<8x128xi1>, vector<8x128xf32>
    %c2_104 = arith.constant 2 : index
    %c0_105 = arith.constant 0 : index
    %116 = vector.load %arg18[%c2_104, %c0_105] : memref<14x128xf32, #tpu.memory_space<vmem>>, vector<8x128xf32>
    tpu.vector_store %arg18[%c2_104, %c0_105], %115 {strides = array<i32>} : memref<14x128xf32, #tpu.memory_space<vmem>>, vector<8x128xf32>,
    %117 = vector.extract_strided_slice %104 {offsets = [0, 128], sizes = [8, 128], strides = [1, 1]} : vector<8x256xf32> to vector<8x128xf32>
    %118 = arith.addf %117, %107 : vector<8x128xf32>
    %cst_106 = arith.constant 0.000000e+00 : f32
    %119 = vector.broadcast %cst_106 : f32 to vector<8x128xf32>
    %120 = arith.maximumf %118, %119 : vector<8x128xf32>
    %cst_107 = arith.constant 0.000000e+00 : f32
    %121 = vector.shape_cast %44 : vector<8x1xi1> to vector<8x1xi1>
    %122 = vector.broadcast %121 : vector<8x1xi1> to vector<8x128xi1>
    %123 = vector.broadcast %cst_107 : f32 to vector<8x128xf32>
    %124 = arith.select %122, %120, %123 : vector<8x128xi1>, vector<8x128xf32>
    %c2_108 = arith.constant 2 : index
    %c0_109 = arith.constant 0 : index
    %125 = vector.load %arg19[%c2_108, %c0_109] : memref<14x128xf32, #tpu.memory_space<vmem>>, vector<8x128xf32>
    tpu.vector_store %arg19[%c2_108, %c0_109], %124 {strides = array<i32>} : memref<14x128xf32, #tpu.memory_space<vmem>>, vector<8x128xf32>,
    %c1_110 = arith.constant 1 : index
    %c0_111 = arith.constant 0 : index
    %126 = vector.load %arg19[%c1_110, %c0_111] : memref<14x128xf32, #tpu.memory_space<vmem>>, vector<10x128xf32>
    %c0_112 = arith.constant 0 : index
    %c0_113 = arith.constant 0 : index
    %127 = vector.load %arg10[%c0_112, %c0_113] : memref<128x96xf32, #tpu.memory_space<vmem>>, vector<128x96xf32>
    %cst_114 = arith.constant dense<0.000000e+00> : vector<10x96xf32>
    %128 = tpu.matmul %126, %127, %cst_114 {dimension_numbers = #tpu.dot_dimension_numbers<[1], [0], [0], [1], [0, 0, 1, 1], [], []>} : vector<10x128xf32>, vector<128x96xf32>, vector<10x96xf32> -> vector<10x96xf32>
    %c2_115 = arith.constant 2 : index
    %c0_116 = arith.constant 0 : index
    %129 = vector.load %arg18[%c2_115, %c0_116] : memref<14x128xf32, #tpu.memory_space<vmem>>, vector<10x128xf32>
    %c0_117 = arith.constant 0 : index
    %c0_118 = arith.constant 0 : index
    %130 = vector.load %arg11[%c0_117, %c0_118] : memref<128x288xf32, #tpu.memory_space<vmem>>, vector<128x288xf32>
    %cst_119 = arith.constant dense<0.000000e+00> : vector<10x288xf32>
    %131 = tpu.matmul %129, %130, %cst_119 {dimension_numbers = #tpu.dot_dimension_numbers<[1], [0], [0], [1], [0, 0, 1, 1], [], []>} : vector<10x128xf32>, vector<128x288xf32>, vector<10x288xf32> -> vector<10x288xf32>
    %c2_120 = arith.constant 2 : index
    %c0_121 = arith.constant 0 : index
    %132 = vector.load %arg19[%c2_120, %c0_121] : memref<14x128xf32, #tpu.memory_space<vmem>>, vector<10x128xf32>
    %c0_122 = arith.constant 0 : index
    %c0_123 = arith.constant 0 : index
    %133 = vector.load %arg12[%c0_122, %c0_123] : memref<128x288xf32, #tpu.memory_space<vmem>>, vector<128x288xf32>
    %cst_124 = arith.constant dense<0.000000e+00> : vector<10x288xf32>
    %134 = tpu.matmul %132, %133, %cst_124 {dimension_numbers = #tpu.dot_dimension_numbers<[1], [0], [0], [1], [0, 0, 1, 1], [], []>} : vector<10x128xf32>, vector<128x288xf32>, vector<10x288xf32> -> vector<10x288xf32>
    %c3_125 = arith.constant 3 : index
    %c0_126 = arith.constant 0 : index
    %135 = vector.load %arg18[%c3_125, %c0_126] : memref<14x128xf32, #tpu.memory_space<vmem>>, vector<10x128xf32>
    %c0_127 = arith.constant 0 : index
    %c0_128 = arith.constant 0 : index
    %136 = vector.load %arg13[%c0_127, %c0_128] : memref<128x96xf32, #tpu.memory_space<vmem>>, vector<128x96xf32>
    %cst_129 = arith.constant dense<0.000000e+00> : vector<10x96xf32>
    %137 = tpu.matmul %135, %136, %cst_129 {dimension_numbers = #tpu.dot_dimension_numbers<[1], [0], [0], [1], [0, 0, 1, 1], [], []>} : vector<10x128xf32>, vector<128x96xf32>, vector<10x96xf32> -> vector<10x96xf32>
    %138 = vector.extract_strided_slice %131 {offsets = [0, 0], sizes = [10, 96], strides = [1, 1]} : vector<10x288xf32> to vector<10x96xf32>
    %139 = arith.addf %128, %138 : vector<10x96xf32>
    %140 = vector.extract_strided_slice %131 {offsets = [0, 96], sizes = [10, 96], strides = [1, 1]} : vector<10x288xf32> to vector<10x96xf32>
    %141 = vector.extract_strided_slice %134 {offsets = [0, 0], sizes = [10, 96], strides = [1, 1]} : vector<10x288xf32> to vector<10x96xf32>
    %142 = arith.addf %140, %141 : vector<10x96xf32>
    %143 = vector.extract_strided_slice %131 {offsets = [0, 192], sizes = [10, 96], strides = [1, 1]} : vector<10x288xf32> to vector<10x96xf32>
    %144 = vector.extract_strided_slice %134 {offsets = [0, 96], sizes = [10, 96], strides = [1, 1]} : vector<10x288xf32> to vector<10x96xf32>
    %145 = arith.addf %143, %144 : vector<10x96xf32>
    %146 = vector.extract_strided_slice %134 {offsets = [0, 192], sizes = [10, 96], strides = [1, 1]} : vector<10x288xf32> to vector<10x96xf32>
    %147 = arith.addf %146, %137 : vector<10x96xf32>
    %148 = tpu.concatenate %139, %142, %145, %147 in 1 : vector<10x96xf32>, vector<10x96xf32>, vector<10x96xf32>, vector<10x96xf32> -> vector<10x384xf32>
    %149 = math.tanh %148 : vector<10x384xf32>
    %c0_130 = arith.constant 0 : index
    %c0_131 = arith.constant 0 : index
    %c0_132 = arith.constant 0 : index
    %150 = vector.load %arg14[%c0_130, %c0_131, %c0_132] : memref<1x10x384xf32, #tpu.memory_space<vmem>>, vector<1x10x384xf32>
    %151 = vector.shape_cast %150 : vector<1x10x384xf32> to vector<10x384xf32>
    %152 = vector.shape_cast %149 : vector<10x384xf32> to vector<1x10x384xf32>
    tpu.vector_store %arg14[%c0_130, %c0_131, %c0_132], %152 {strides = array<i32>} : memref<1x10x384xf32, #tpu.memory_space<vmem>>, vector<1x10x384xf32>,
    return
  }
  func.func @transform_0(%arg0: i32) -> (i32, i32) {
    %c0_i32 = arith.constant 0 : i32
    %c0_i32_0 = arith.constant 0 : i32
    %c0_i32_1 = arith.constant 0 : i32
    return %c0_i32, %c0_i32_0 : i32, i32
  }
  func.func @transform_1(%arg0: i32) -> (i32, i32) {
    %c0_i32 = arith.constant 0 : i32
    %c0_i32_0 = arith.constant 0 : i32
    %c0_i32_1 = arith.constant 0 : i32
    return %c0_i32, %c0_i32_0 : i32, i32
  }
  func.func @transform_2(%arg0: i32) -> (i32, i32) {
    %c0_i32 = arith.constant 0 : i32
    %c0_i32_0 = arith.constant 0 : i32
    %c0_i32_1 = arith.constant 0 : i32
    return %c0_i32, %c0_i32_0 : i32, i32
  }
  func.func @transform_3(%arg0: i32) -> (i32, i32) {
    %c0_i32 = arith.constant 0 : i32
    %c0_i32_0 = arith.constant 0 : i32
    %c0_i32_1 = arith.constant 0 : i32
    return %c0_i32, %c0_i32_0 : i32, i32
  }
  func.func @transform_4(%arg0: i32) -> (i32, i32, i32) {
    %c0_i32 = arith.constant 0 : i32
    %c0_i32_0 = arith.constant 0 : i32
    %c0_i32_1 = arith.constant 0 : i32
    %c0_i32_2 = arith.constant 0 : i32
    return %c0_i32, %c0_i32_0, %c0_i32_1 : i32, i32, i32
  }
  func.func @transform_5(%arg0: i32) -> (i32, i32, i32) {
    %c0_i32 = arith.constant 0 : i32
    %c0_i32_0 = arith.constant 0 : i32
    %c0_i32_1 = arith.constant 0 : i32
    %c0_i32_2 = arith.constant 0 : i32
    return %c0_i32, %c0_i32_0, %c0_i32_1 : i32, i32, i32
  }
  func.func @transform_6(%arg0: i32) -> (i32, i32) {
    %c0_i32 = arith.constant 0 : i32
    %c0_i32_0 = arith.constant 0 : i32
    %c0_i32_1 = arith.constant 0 : i32
    return %c0_i32, %c0_i32_0 : i32, i32
  }
  func.func @transform_7(%arg0: i32) -> (i32, i32) {
    %c0_i32 = arith.constant 0 : i32
    %c0_i32_0 = arith.constant 0 : i32
    %c0_i32_1 = arith.constant 0 : i32
    return %c0_i32, %c0_i32_0 : i32, i32
  }
  func.func @transform_8(%arg0: i32) -> (i32, i32) {
    %c0_i32 = arith.constant 0 : i32
    %c0_i32_0 = arith.constant 0 : i32
    %c0_i32_1 = arith.constant 0 : i32
    return %c0_i32, %c0_i32_0 : i32, i32
  }
  func.func @transform_9(%arg0: i32) -> (i32, i32) {
    %c0_i32 = arith.constant 0 : i32
    %c0_i32_0 = arith.constant 0 : i32
    %c0_i32_1 = arith.constant 0 : i32
    return %c0_i32, %c0_i32_0 : i32, i32
  }
  func.func @transform_10(%arg0: i32) -> (i32, i32) {
    %c0_i32 = arith.constant 0 : i32
    %c0_i32_0 = arith.constant 0 : i32
    %c0_i32_1 = arith.constant 0 : i32
    return %c0_i32, %c0_i32_0 : i32, i32
  }
  func.func @transform_11(%arg0: i32) -> (i32, i32) {
    %c0_i32 = arith.constant 0 : i32
    %c0_i32_0 = arith.constant 0 : i32
    %c0_i32_1 = arith.constant 0 : i32
    return %c0_i32, %c0_i32_0 : i32, i32
  }
  func.func @transform_12(%arg0: i32) -> (i32, i32) {
    %c0_i32 = arith.constant 0 : i32
    %c0_i32_0 = arith.constant 0 : i32
    %c0_i32_1 = arith.constant 0 : i32
    return %c0_i32, %c0_i32_0 : i32, i32
  }
  func.func @transform_13(%arg0: i32) -> (i32, i32, i32) {
    %c0_i32 = arith.constant 0 : i32
    %c0_i32_0 = arith.constant 0 : i32
    %c0_i32_1 = arith.constant 0 : i32
    return %arg0, %c0_i32, %c0_i32_0 : i32, i32, i32
  }
}

</mosaic_0001>

<bundles_post_ra>
// kernel: _lambda_.1
= control target key start
LH: loop header
LB: loop body
LE: loop exit
PB: predicated region body
PF: predicated region fallthrough
CT: control target
= control target key end

     0   :  { %s3807_s25 = smov 0   ;;  %s5571_s0 = inlined_call_operand.vmem [shape: f32[2,16], index: 0, kind: input, shape index: {}]   ;;  %s5572_s1 = inlined_call_operand.vmem [shape: f32[16,128], index: 1, kind: input, shape index: {}]   ;;  %s5573_s2 = inlined_call_operand.vmem [shape: f32[1,128], index: 2, kind: input, shape index: {}]   ;;  %s5574_s3 = inlined_call_operand.vmem [shape: f32[128,1280], index: 3, kind: input, shape index: {}]   ;;  %s5575_s4 = inlined_call_operand.vmem [shape: f32[5,128,128], index: 4, kind: input, shape index: {}]   ;;  %s5576_s5 = inlined_call_operand.vmem [shape: f32[3,128,128], index: 5, kind: input, shape index: {}]   ;;  %s5577_s6 = inlined_call_operand.vmem [shape: f32[128,128], index: 6, kind: input, shape index: {}]   ;;  %s5578_s7 = inlined_call_operand.vmem [shape: f32[128,256], index: 7, kind: input, shape index: {}]   ;;  %s5579_s8 = inlined_call_operand.vmem [shape: f32[128,128], index: 8, kind: input, shape index: {}]   ;;  %s5580_s9 = inlined_call_operand.vmem [shape: f32[128,96], index: 9, kind: input, shape index: {}]   ;;  %s5581_s10 = inlined_call_operand.vmem [shape: f32[128,288], index: 10, kind: input, shape index: {}]   ;;  %s5582_s11 = inlined_call_operand.vmem [shape: f32[128,288], index: 11, kind: input, shape index: {}]   ;;  %s5583_s12 = inlined_call_operand.vmem [shape: f32[128,96], index: 12, kind: input, shape index: {}]   ;;  %s5584_s13 = inlined_call_operand.vmem [shape: f32[2,10,384], index: 13, kind: output, shape index: {}]  }
   0x1 LB: > { %s3813_s26 = sadd.s32 4294967295, %s3730_s25   ;;  %p2846_p0 = scmp.ge.s32.totalorder %s3730_s25, 1  ;;  %s3730_s25 = sphi %s3807_s25, %s23_s25  }
   0x2   : > { %p377_p1 = scmp.lt.s32.totalorder %s3730_s25, 3 }
   0x4   : > { %p378_p2 = pnand %p2846_p0, %p377_p1 }
   0x5   : > { %s429_s14 = scalar_lea.vmem (!%p378_p2), %s5571_s0, %s3813_s26  ;;  %s3735_s19 = smov (!%p378_p2), 96  }
   0x6   : > { %381 = sbr.rel (%p378_p2) target bundleno = 1701 (0x6a5), region = 72  ;;  %s3736_s20 = smov (!%p378_p2), 64  }
   0x7   : > { %p416_p3 = scmp.lt.s32.totalorder (!%p378_p2), %s3813_s26, 1 }
   0xb   : > { %v432_v0 = vld [vmem:[%s5572_s1 + $0x8] sm:$0xff]  ;;  %v660_v1 = vld [vmem:[%s5574_s3 + $0x4b8] sm:$0xff]  ;;  %v3732_v2 = vmov 0.0   ;;  %v431_v3 = vld [vmem:[%s5572_s1] sm:$0xff]  ;;  %vm3733_vm0 = vmmov 0   ;;  %vm434_vm1 = vcmask 130048  }
   0xc   : > { %3193 = vmatprep.subr.mxu0 %v3732_v2  ;;  %421 = vst [vmem:[#allocation2] sm:$0x3] %v3732_v2  ;;  %422 = vst [vmem:[#allocation3] sm:$0x3] %v3732_v2  ;;  %3197 = vmatprep.mubr.msk.f32.mxu0 %vm3733_vm0, %v3732_v2  ;;  %v659_v4 = vld [vmem:[%s5574_s3 + $0x4b0] sm:$0xff]  ;;  %v662_v6 = vld [vmem:[%s5574_s3 + $0x4c8] sm:$0xff] }
   0xd   : > { %423 = vst [vmem:[#allocation3 + $0xa] sm:$0x3] %v3732_v2  ;;  %424 = vst [vmem:[#allocation4] sm:$0x3] %v3732_v2  ;;  %3194 = vmatpush3.msra.mxu0 %v432_v0  ;;  %v430_v5 = vld [vmem:[%s429_s14] sm:$0x1]  ;;  %669 = vmatprep.subr.mxu1 %v660_v1 }
   0xe   : > { %425 = vst [vmem:[#allocation4 + $0xa] sm:$0x3] %v3732_v2  ;;  %426 = vst [vmem:[#allocation6] sm:$0x3] %v3732_v2  ;;  %v650_v7 = vld [vmem:[%s5574_s3 + $0x468] sm:$0xff]  ;;  %3195 = vmatprep.subr.mxu0 %v3732_v2  ;;  %670 = vmatpush1.msra.mxu1 %v659_v4  ;;  %v661_v8 = vld [vmem:[%s5574_s3 + $0x4c0] sm:$0xff] }
   0xf   : > { %427 = vst [vmem:[#allocation5 + $0xa] sm:$0xf] %v3732_v2  ;;  %428 = vst [vmem:[#allocation6 + $0xa] sm:$0xf] %v3732_v2  ;;  %v649_v9 = vld [vmem:[%s5574_s3 + $0x460] sm:$0xff]  ;;  %3196 = vmatpush3.msra.mxu0 %v431_v3  ;;  %671 = vmatprep.subr.mxu1 %v650_v7  ;;  %v652_v10 = vld [vmem:[%s5574_s3 + $0x478] sm:$0xff] }
  0x10   : > { %v640_v11 = vld [vmem:[%s5574_s3 + $0x418] sm:$0xff]  ;;  %3198 = vmatmul.mubr.msk.f32.vlgmr.msra.gmra.mxu0 %vm434_vm1, %v430_v5  ;;  %740 = vmatprep.subr.mxu0 %v662_v6  ;;  %v651_v12 = vld [vmem:[%s5574_s3 + $0x470] sm:$0xff]  ;;  %v642_v14 = vld [vmem:[%s5574_s3 + $0x428] sm:$0xff]  ;;  %vm2740_vm6 = vcmask 785408   ;;  %s5588_s26 = smov (!%p416_p3, %s3813_s26), 1  ;;  %vm2781_vm7 = vcmask 523264  }
  0x11   : > { %v639_v13 = vld [vmem:[%s5574_s3 + $0x410] sm:$0xff]  ;;  %741 = vmatpush1.msra.mxu0 %v661_v8  ;;  %672 = vmatpush1.msra.mxu1 %v649_v9  ;;  %v630_v15 = vld [vmem:[%s5574_s3 + $0x3c8] sm:$0xff]  ;;  %v641_v16 = vld [vmem:[%s5574_s3 + $0x420] sm:$0xff]  ;;  %s3690_s21 = smul.u32 48, %s5588_s26  ;;  %vm2784_vm8 = vcmask 261120  }
  0x12   : > { %742 = vmatprep.subr.mxu0 %v652_v10  ;;  %673 = vmatprep.subr.mxu1 %v640_v11  ;;  %v629_v17 = vld [vmem:[%s5574_s3 + $0x3c0] sm:$0xff]  ;;  %v632_v18 = vld [vmem:[%s5574_s3 + $0x3d8] sm:$0xff]  ;;  %v631_v20 = vld [vmem:[%s5574_s3 + $0x3d0] sm:$0xff] }
  0x13   : > { %743 = vmatpush1.msra.mxu0 %v651_v12  ;;  %674 = vmatpush1.msra.mxu1 %v639_v13  ;;  %v620_v19 = vld [vmem:[%s5574_s3 + $0x378] sm:$0xff]  ;;  %v619_v21 = vld [vmem:[%s5574_s3 + $0x370] sm:$0xff]  ;;  %v622_v22 = vld [vmem:[%s5574_s3 + $0x388] sm:$0xff]  ;;  %s5550_s24 = scalar_lea.vmem %s5584_s13, %s3690_s21 }
  0x14   : > { %744 = vmatprep.subr.mxu0 %v642_v14  ;;  %675 = vmatprep.subr.mxu1 %v630_v15  ;;  %v610_v23 = vld [vmem:[%s5574_s3 + $0x328] sm:$0xff]  ;;  %v621_v24 = vld [vmem:[%s5574_s3 + $0x380] sm:$0xff]  ;;  %v612_v26 = vld [vmem:[%s5574_s3 + $0x338] sm:$0xff] }
  0x15   : > { %745 = vmatpush1.msra.mxu0 %v641_v16  ;;  %676 = vmatpush1.msra.mxu1 %v629_v17  ;;  %v609_v25 = vld [vmem:[%s5574_s3 + $0x320] sm:$0xff]  ;;  %v600_v27 = vld [vmem:[%s5574_s3 + $0x2d8] sm:$0xff]  ;;  %v611_v28 = vld [vmem:[%s5574_s3 + $0x330] sm:$0xff] }
  0x16   : > { %746 = vmatprep.subr.mxu0 %v632_v18  ;;  %677 = vmatprep.subr.mxu1 %v620_v19  ;;  %v599_v29 = vld [vmem:[%s5574_s3 + $0x2d0] sm:$0xff]  ;;  %v602_v30 = vld [vmem:[%s5574_s3 + $0x2e8] sm:$0xff]  ;;  %v601_v32 = vld [vmem:[%s5574_s3 + $0x2e0] sm:$0xff] }
  0x17   : > { %747 = vmatpush1.msra.mxu0 %v631_v20  ;;  %678 = vmatpush1.msra.mxu1 %v619_v21  ;;  %v590_v31 = vld [vmem:[%s5574_s3 + $0x288] sm:$0xff]  ;;  %v589_v33 = vld [vmem:[%s5574_s3 + $0x280] sm:$0xff]  ;;  %v592_v34 = vld [vmem:[%s5574_s3 + $0x298] sm:$0xff] }
  0x18   : > { %748 = vmatprep.subr.mxu0 %v622_v22  ;;  %679 = vmatprep.subr.mxu1 %v610_v23  ;;  %v580_v35 = vld [vmem:[%s5574_s3 + $0x238] sm:$0xff]  ;;  %v591_v36 = vld [vmem:[%s5574_s3 + $0x290] sm:$0xff]  ;;  %v582_v38 = vld [vmem:[%s5574_s3 + $0x248] sm:$0xff] }
  0x19   : > { %749 = vmatpush1.msra.mxu0 %v621_v24  ;;  %680 = vmatpush1.msra.mxu1 %v609_v25  ;;  %v579_v37 = vld [vmem:[%s5574_s3 + $0x230] sm:$0xff]  ;;  %v570_v39 = vld [vmem:[%s5574_s3 + $0x1e8] sm:$0xff]  ;;  %v581_v40 = vld [vmem:[%s5574_s3 + $0x240] sm:$0xff] }
  0x1a   : > { %750 = vmatprep.subr.mxu0 %v612_v26  ;;  %681 = vmatprep.subr.mxu1 %v600_v27  ;;  %v569_v41 = vld [vmem:[%s5574_s3 + $0x1e0] sm:$0xff]  ;;  %v572_v42 = vld [vmem:[%s5574_s3 + $0x1f8] sm:$0xff]  ;;  %v571_v44 = vld [vmem:[%s5574_s3 + $0x1f0] sm:$0xff] }
  0x1b   : > { %751 = vmatpush1.msra.mxu0 %v611_v28  ;;  %682 = vmatpush1.msra.mxu1 %v599_v29  ;;  %v560_v43 = vld [vmem:[%s5574_s3 + $0x198] sm:$0xff]  ;;  %v559_v45 = vld [vmem:[%s5574_s3 + $0x190] sm:$0xff]  ;;  %v562_v46 = vld [vmem:[%s5574_s3 + $0x1a8] sm:$0xff] }
  0x1c   : > { %752 = vmatprep.subr.mxu0 %v602_v30  ;;  %683 = vmatprep.subr.mxu1 %v590_v31  ;;  %v550_v47 = vld [vmem:[%s5574_s3 + $0x148] sm:$0xff]  ;;  %v561_v48 = vld [vmem:[%s5574_s3 + $0x1a0] sm:$0xff]  ;;  %v552_v50 = vld [vmem:[%s5574_s3 + $0x158] sm:$0xff] }
  0x1d   : > { %753 = vmatpush1.msra.mxu0 %v601_v32  ;;  %684 = vmatpush1.msra.mxu1 %v589_v33  ;;  %v549_v49 = vld [vmem:[%s5574_s3 + $0x140] sm:$0xff]  ;;  %v540_v51 = vld [vmem:[%s5574_s3 + $0xf8] sm:$0xff]  ;;  %v551_v52 = vld [vmem:[%s5574_s3 + $0x150] sm:$0xff] }
  0x1e   : > { %754 = vmatprep.subr.mxu0 %v592_v34  ;;  %685 = vmatprep.subr.mxu1 %v580_v35  ;;  %v539_v53 = vld [vmem:[%s5574_s3 + $0xf0] sm:$0xff]  ;;  %v542_v54 = vld [vmem:[%s5574_s3 + $0x108] sm:$0xff]  ;;  %v541_v56 = vld [vmem:[%s5574_s3 + $0x100] sm:$0xff] }
  0x1f   : > { %755 = vmatpush1.msra.mxu0 %v591_v36  ;;  %686 = vmatpush1.msra.mxu1 %v579_v37  ;;  %v530_v55 = vld [vmem:[%s5574_s3 + $0xa8] sm:$0xff]  ;;  %v529_v57 = vld [vmem:[%s5574_s3 + $0xa0] sm:$0xff]  ;;  %v532_v58 = vld [vmem:[%s5574_s3 + $0xb8] sm:$0xff] }
  0x20   : > { %756 = vmatprep.subr.mxu0 %v582_v38  ;;  %687 = vmatprep.subr.mxu1 %v570_v39  ;;  %v531_v59 = vld [vmem:[%s5574_s3 + $0xb0] sm:$0xff]  ;;  %v520_v60 = vld [vmem:[%s5574_s3 + $0x58] sm:$0xff]  ;;  %v522_v61 = vld [vmem:[%s5574_s3 + $0x68] sm:$0xff] }
  0x21   : > { %757 = vmatpush1.msra.mxu0 %v581_v40  ;;  %688 = vmatpush1.msra.mxu1 %v569_v41  ;;  %v519_v62 = vld [vmem:[%s5574_s3 + $0x50] sm:$0xff]  ;;  %v521_v63 = vld [vmem:[%s5574_s3 + $0x60] sm:$0xff]  ;;  %v510_v0 = vld [vmem:[%s5574_s3 + $0x8] sm:$0xff] }
  0x22   : > { %758 = vmatprep.subr.mxu0 %v572_v42  ;;  %689 = vmatprep.subr.mxu1 %v560_v43  ;;  %v512_v1 = vld [vmem:[%s5574_s3 + $0x18] sm:$0xff]  ;;  %v509_v3 = vld [vmem:[%s5574_s3] sm:$0xff]  ;;  %v511_v4 = vld [vmem:[%s5574_s3 + $0x10] sm:$0xff] }
  0x23   : > { %759 = vmatpush1.msra.mxu0 %v571_v44  ;;  %690 = vmatpush1.msra.mxu1 %v559_v45  ;;  %v664_v5 = vld [vmem:[%s5574_s3 + $0x4d8] sm:$0xff]  ;;  %v666_v6 = vld [vmem:[%s5574_s3 + $0x4e8] sm:$0xff]  ;;  %v433_v7 = vld [vmem:[%s5573_s2] sm:$0x1] }
  0x24   : > { %760 = vmatprep.subr.mxu0 %v562_v46  ;;  %691 = vmatprep.subr.mxu1 %v550_v47  ;;  %v663_v12 = vld [vmem:[%s5574_s3 + $0x4d0] sm:$0xff]  ;;  %v665_v13 = vld [vmem:[%s5574_s3 + $0x4e0] sm:$0xff]  ;;  %v654_v14 = vld [vmem:[%s5574_s3 + $0x488] sm:$0xff] }
  0x25   : > { %761 = vmatpush1.msra.mxu0 %v561_v48  ;;  %692 = vmatpush1.msra.mxu1 %v549_v49  ;;  %v656_v15 = vld [vmem:[%s5574_s3 + $0x498] sm:$0xff]  ;;  %v653_v16 = vld [vmem:[%s5574_s3 + $0x480] sm:$0xff]  ;;  %v655_v17 = vld [vmem:[%s5574_s3 + $0x490] sm:$0xff] }
  0x26   : > { %762 = vmatprep.subr.mxu0 %v552_v50  ;;  %693 = vmatprep.subr.mxu1 %v540_v51  ;;  %v644_v18 = vld [vmem:[%s5574_s3 + $0x438] sm:$0xff]  ;;  %v646_v19 = vld [vmem:[%s5574_s3 + $0x448] sm:$0xff]  ;;  %v643_v20 = vld [vmem:[%s5574_s3 + $0x430] sm:$0xff] }
  0x27   : > { %763 = vmatpush1.msra.mxu0 %v551_v52  ;;  %694 = vmatpush1.msra.mxu1 %v539_v53  ;;  %v645_v21 = vld [vmem:[%s5574_s3 + $0x440] sm:$0xff]  ;;  %v634_v22 = vld [vmem:[%s5574_s3 + $0x3e8] sm:$0xff]  ;;  %v636_v23 = vld [vmem:[%s5574_s3 + $0x3f8] sm:$0xff] }
  0x28   : > { %764 = vmatprep.subr.mxu0 %v542_v54  ;;  %695 = vmatprep.subr.mxu1 %v530_v55  ;;  %v633_v24 = vld [vmem:[%s5574_s3 + $0x3e0] sm:$0xff]  ;;  %v635_v25 = vld [vmem:[%s5574_s3 + $0x3f0] sm:$0xff]  ;;  %v624_v26 = vld [vmem:[%s5574_s3 + $0x398] sm:$0xff] }
  0x29   : > { %765 = vmatpush1.msra.mxu0 %v541_v56  ;;  %696 = vmatpush1.msra.mxu1 %v529_v57  ;;  %v626_v27 = vld [vmem:[%s5574_s3 + $0x3a8] sm:$0xff]  ;;  %v623_v28 = vld [vmem:[%s5574_s3 + $0x390] sm:$0xff]  ;;  %v625_v29 = vld [vmem:[%s5574_s3 + $0x3a0] sm:$0xff] }
  0x2a   : > { %766 = vmatprep.subr.mxu0 %v532_v58  ;;  %733 = vmatprep.mubr.f32.mxu1 %v3732_v2  ;;  %v614_v30 = vld [vmem:[%s5574_s3 + $0x348] sm:$0xff]  ;;  %v616_v31 = vld [vmem:[%s5574_s3 + $0x358] sm:$0xff]  ;;  %v613_v32 = vld [vmem:[%s5574_s3 + $0x340] sm:$0xff] }
  0x2b   : > { %767 = vmatpush1.msra.mxu0 %v531_v59  ;;  %804 = vmatprep.mubr.f32.mxu0 %v3732_v2  ;;  %v615_v33 = vld [vmem:[%s5574_s3 + $0x350] sm:$0xff]  ;;  %v604_v34 = vld [vmem:[%s5574_s3 + $0x2f8] sm:$0xff]  ;;  %v606_v35 = vld [vmem:[%s5574_s3 + $0x308] sm:$0xff] }
  0x2c   : > { %697 = vmatprep.subr.mxu1 %v520_v60  ;;  %768 = vmatprep.subr.mxu0 %v522_v61  ;;  %v603_v36 = vld [vmem:[%s5574_s3 + $0x2f0] sm:$0xff]  ;;  %v605_v37 = vld [vmem:[%s5574_s3 + $0x300] sm:$0xff]  ;;  %v594_v38 = vld [vmem:[%s5574_s3 + $0x2a8] sm:$0xff] }
  0x2d   : > { %698 = vmatpush1.msra.mxu1 %v519_v62  ;;  %769 = vmatpush1.msra.mxu0 %v521_v63  ;;  %v596_v39 = vld [vmem:[%s5574_s3 + $0x2b8] sm:$0xff]  ;;  %v593_v40 = vld [vmem:[%s5574_s3 + $0x2a0] sm:$0xff]  ;;  %v595_v41 = vld [vmem:[%s5574_s3 + $0x2b0] sm:$0xff] }
  0x2e   : > { %699 = vmatprep.subr.mxu1 %v510_v0  ;;  %770 = vmatprep.subr.mxu0 %v512_v1  ;;  %v584_v42 = vld [vmem:[%s5574_s3 + $0x258] sm:$0xff]  ;;  %v586_v43 = vld [vmem:[%s5574_s3 + $0x268] sm:$0xff]  ;;  %v583_v44 = vld [vmem:[%s5574_s3 + $0x250] sm:$0xff] }
  0x2f   : > { %700 = vmatpush1.msra.mxu1 %v509_v3  ;;  %771 = vmatpush1.msra.mxu0 %v511_v4  ;;  %v585_v45 = vld [vmem:[%s5574_s3 + $0x260] sm:$0xff]  ;;  %v574_v46 = vld [vmem:[%s5574_s3 + $0x208] sm:$0xff]  ;;  %v576_v47 = vld [vmem:[%s5574_s3 + $0x218] sm:$0xff] }
  0x30   : > { %811 = vmatprep.subr.mxu1 %v664_v5  ;;  %882 = vmatprep.subr.mxu0 %v666_v6  ;;  %v573_v48 = vld [vmem:[%s5574_s3 + $0x200] sm:$0xff]  ;;  %v575_v49 = vld [vmem:[%s5574_s3 + $0x210] sm:$0xff]  ;;  %v564_v50 = vld [vmem:[%s5574_s3 + $0x1b8] sm:$0xff] }
  0x31   : > { %v566_v51 = vld [vmem:[%s5574_s3 + $0x1c8] sm:$0xff]  ;;  %v563_v52 = vld [vmem:[%s5574_s3 + $0x1b0] sm:$0xff]  ;;  %v565_v53 = vld [vmem:[%s5574_s3 + $0x1c0] sm:$0xff] }
  0x32   : > { %v554_v54 = vld [vmem:[%s5574_s3 + $0x168] sm:$0xff]  ;;  %v556_v55 = vld [vmem:[%s5574_s3 + $0x178] sm:$0xff]  ;;  %v553_v56 = vld [vmem:[%s5574_s3 + $0x160] sm:$0xff] }
  0x33   : > { %v555_v57 = vld [vmem:[%s5574_s3 + $0x170] sm:$0xff]  ;;  %v544_v58 = vld [vmem:[%s5574_s3 + $0x118] sm:$0xff]  ;;  %v546_v59 = vld [vmem:[%s5574_s3 + $0x128] sm:$0xff] }
  0x34   : > { %v543_v60 = vld [vmem:[%s5574_s3 + $0x110] sm:$0xff]  ;;  %v545_v61 = vld [vmem:[%s5574_s3 + $0x120] sm:$0xff]  ;;  %v534_v62 = vld [vmem:[%s5574_s3 + $0xc8] sm:$0xff] }
  0x35   : > { %v536_v63 = vld [vmem:[%s5574_s3 + $0xd8] sm:$0xff]  ;;  %v533_v0 = vld [vmem:[%s5574_s3 + $0xc0] sm:$0xff]  ;;  %v535_v1 = vld [vmem:[%s5574_s3 + $0xd0] sm:$0xff] }
  0x36   : > { %v524_v3 = vld [vmem:[%s5574_s3 + $0x78] sm:$0xff]  ;;  %v526_v4 = vld [vmem:[%s5574_s3 + $0x88] sm:$0xff]  ;;  %v523_v5 = vld [vmem:[%s5574_s3 + $0x70] sm:$0xff] }
  0x37   : > { %v525_v6 = vld [vmem:[%s5574_s3 + $0x80] sm:$0xff] }
  0xd0   : > { %v504_v8 = vpop.f32.mrf.mxu0 }
  0xd1   : > { %v505_v9 = vadd.f32 %v504_v8, %v433_v7  ;;  %v514_v7 = vld [vmem:[%s5574_s3 + $0x28] sm:$0xff]  ;;  %v516_v8 = vld [vmem:[%s5574_s3 + $0x38] sm:$0xff] }
  0xd2   : > { %v3199_v10 = vpop.f32.mrf.mxu0 }
  0xd3   : > { %v4042_v11 = vmax.f32 %v505_v9, 0.0  ;;  %v513_v9 = vld [vmem:[%s5574_s3 + $0x20] sm:$0xff]  ;;  %v515_v10 = vld [vmem:[%s5574_s3 + $0x30] sm:$0xff] }
  0xd5   : > { %734 = vmatmul.mubr.f32.vlgmr.msra.gmra.mxu1 %v4042_v11  ;;  %805 = vmatmul.mubr.f32.vlgmr.msra.gmra.mxu0 %v4042_v11 }
  0xd6   : > { %812 = vmatpush1.msra.mxu1 %v663_v12  ;;  %883 = vmatpush1.msra.mxu0 %v665_v13  ;;  %v668_v12 = vld [vmem:[%s5574_s3 + $0x4f8] sm:$0xff]  ;;  %v667_v13 = vld [vmem:[%s5574_s3 + $0x4f0] sm:$0xff] }
  0xd7   : > { %813 = vmatprep.subr.mxu1 %v654_v14  ;;  %884 = vmatprep.subr.mxu0 %v656_v15  ;;  %v658_v14 = vld [vmem:[%s5574_s3 + $0x4a8] sm:$0xff]  ;;  %v657_v15 = vld [vmem:[%s5574_s3 + $0x4a0] sm:$0xff] }
  0xd8   : > { %814 = vmatpush1.msra.mxu1 %v653_v16  ;;  %885 = vmatpush1.msra.mxu0 %v655_v17  ;;  %v648_v16 = vld [vmem:[%s5574_s3 + $0x458] sm:$0xff]  ;;  %v647_v17 = vld [vmem:[%s5574_s3 + $0x450] sm:$0xff] }
  0xd9   : > { %815 = vmatprep.subr.mxu1 %v644_v18  ;;  %886 = vmatprep.subr.mxu0 %v646_v19  ;;  %v638_v18 = vld [vmem:[%s5574_s3 + $0x408] sm:$0xff]  ;;  %v637_v19 = vld [vmem:[%s5574_s3 + $0x400] sm:$0xff] }
  0xda   : > { %816 = vmatpush1.msra.mxu1 %v643_v20  ;;  %887 = vmatpush1.msra.mxu0 %v645_v21  ;;  %v628_v20 = vld [vmem:[%s5574_s3 + $0x3b8] sm:$0xff]  ;;  %v627_v21 = vld [vmem:[%s5574_s3 + $0x3b0] sm:$0xff] }
  0xdb   : > { %817 = vmatprep.subr.mxu1 %v634_v22  ;;  %888 = vmatprep.subr.mxu0 %v636_v23  ;;  %v618_v22 = vld [vmem:[%s5574_s3 + $0x368] sm:$0xff]  ;;  %v617_v23 = vld [vmem:[%s5574_s3 + $0x360] sm:$0xff] }
  0xdc   : > { %818 = vmatpush1.msra.mxu1 %v633_v24  ;;  %889 = vmatpush1.msra.mxu0 %v635_v25  ;;  %v608_v24 = vld [vmem:[%s5574_s3 + $0x318] sm:$0xff]  ;;  %v607_v25 = vld [vmem:[%s5574_s3 + $0x310] sm:$0xff] }
  0xdd   : > { %819 = vmatprep.subr.mxu1 %v624_v26  ;;  %890 = vmatprep.subr.mxu0 %v626_v27  ;;  %v598_v26 = vld [vmem:[%s5574_s3 + $0x2c8] sm:$0xff]  ;;  %v597_v27 = vld [vmem:[%s5574_s3 + $0x2c0] sm:$0xff] }
  0xde   : > { %820 = vmatpush1.msra.mxu1 %v623_v28  ;;  %891 = vmatpush1.msra.mxu0 %v625_v29  ;;  %v588_v28 = vld [vmem:[%s5574_s3 + $0x278] sm:$0xff]  ;;  %v587_v29 = vld [vmem:[%s5574_s3 + $0x270] sm:$0xff] }
  0xdf   : > { %821 = vmatprep.subr.mxu1 %v614_v30  ;;  %892 = vmatprep.subr.mxu0 %v616_v31  ;;  %v578_v30 = vld [vmem:[%s5574_s3 + $0x228] sm:$0xff]  ;;  %v577_v31 = vld [vmem:[%s5574_s3 + $0x220] sm:$0xff] }
  0xe0   : > { %822 = vmatpush1.msra.mxu1 %v613_v32  ;;  %893 = vmatpush1.msra.mxu0 %v615_v33  ;;  %v568_v32 = vld [vmem:[%s5574_s3 + $0x1d8] sm:$0xff]  ;;  %v567_v33 = vld [vmem:[%s5574_s3 + $0x1d0] sm:$0xff] }
  0xe1   : > { %823 = vmatprep.subr.mxu1 %v604_v34  ;;  %894 = vmatprep.subr.mxu0 %v606_v35  ;;  %v558_v34 = vld [vmem:[%s5574_s3 + $0x188] sm:$0xff]  ;;  %v557_v35 = vld [vmem:[%s5574_s3 + $0x180] sm:$0xff] }
  0xe2   : > { %824 = vmatpush1.msra.mxu1 %v603_v36  ;;  %895 = vmatpush1.msra.mxu0 %v605_v37  ;;  %v548_v36 = vld [vmem:[%s5574_s3 + $0x138] sm:$0xff]  ;;  %v547_v37 = vld [vmem:[%s5574_s3 + $0x130] sm:$0xff] }
  0xe3   : > { %825 = vmatprep.subr.mxu1 %v594_v38  ;;  %896 = vmatprep.subr.mxu0 %v596_v39  ;;  %v538_v38 = vld [vmem:[%s5574_s3 + $0xe8] sm:$0xff]  ;;  %v537_v39 = vld [vmem:[%s5574_s3 + $0xe0] sm:$0xff] }
  0xe4   : > { %826 = vmatpush1.msra.mxu1 %v593_v40  ;;  %897 = vmatpush1.msra.mxu0 %v595_v41  ;;  %v528_v40 = vld [vmem:[%s5574_s3 + $0x98] sm:$0xff]  ;;  %v527_v41 = vld [vmem:[%s5574_s3 + $0x90] sm:$0xff] }
  0xe5   : > { %827 = vmatprep.subr.mxu1 %v584_v42  ;;  %898 = vmatprep.subr.mxu0 %v586_v43  ;;  %v518_v42 = vld [vmem:[%s5574_s3 + $0x48] sm:$0xff]  ;;  %v517_v43 = vld [vmem:[%s5574_s3 + $0x40] sm:$0xff] }
  0xe6   : > { %828 = vmatpush1.msra.mxu1 %v583_v44  ;;  %899 = vmatpush1.msra.mxu0 %v585_v45  ;;  %v2865_v44 = vld [vmem:[%s5575_s4 + $0xf8] sm:$0xff] }
  0xe7   : > { %829 = vmatprep.subr.mxu1 %v574_v46  ;;  %900 = vmatprep.subr.mxu0 %v576_v47  ;;  %v1147_v45 = vld [vmem:[%s5575_s4 + $0x78] sm:$0xff]  ;;  %v2864_v46 = vld [vmem:[%s5575_s4 + $0xf0] sm:$0xff]  ;;  %v2863_v47 = vld [vmem:[%s5575_s4 + $0xe8] sm:$0xff] }
  0xe8   : > { %830 = vmatpush1.msra.mxu1 %v573_v48  ;;  %901 = vmatpush1.msra.mxu0 %v575_v49  ;;  %v1145_v48 = vld [vmem:[%s5575_s4 + $0x68] sm:$0xff]  ;;  %v2862_v49 = vld [vmem:[%s5575_s4 + $0xe0] sm:$0xff] }
  0xe9   : > { %831 = vmatprep.subr.mxu1 %v564_v50  ;;  %902 = vmatprep.subr.mxu0 %v566_v51  ;;  %v1144_v50 = vld [vmem:[%s5575_s4 + $0x60] sm:$0xff]  ;;  %v2861_v51 = vld [vmem:[%s5575_s4 + $0xd8] sm:$0xff] }
  0xea   : > { %832 = vmatpush1.msra.mxu1 %v563_v52  ;;  %903 = vmatpush1.msra.mxu0 %v565_v53  ;;  %v1143_v52 = vld [vmem:[%s5575_s4 + $0x58] sm:$0xff]  ;;  %v2860_v53 = vld [vmem:[%s5575_s4 + $0xd0] sm:$0xff] }
  0xeb   : > { %833 = vmatprep.subr.mxu1 %v554_v54  ;;  %904 = vmatprep.subr.mxu0 %v556_v55  ;;  %v1142_v54 = vld [vmem:[%s5575_s4 + $0x50] sm:$0xff]  ;;  %v2859_v55 = vld [vmem:[%s5575_s4 + $0xc8] sm:$0xff] }
  0xec   : > { %834 = vmatpush1.msra.mxu1 %v553_v56  ;;  %905 = vmatpush1.msra.mxu0 %v555_v57  ;;  %v1141_v56 = vld [vmem:[%s5575_s4 + $0x48] sm:$0xff]  ;;  %v2858_v57 = vld [vmem:[%s5575_s4 + $0xc0] sm:$0xff] }
  0xed   : > { %835 = vmatprep.subr.mxu1 %v544_v58  ;;  %906 = vmatprep.subr.mxu0 %v546_v59  ;;  %v1140_v58 = vld [vmem:[%s5575_s4 + $0x40] sm:$0xff]  ;;  %v2857_v59 = vld [vmem:[%s5575_s4 + $0xb8] sm:$0xff] }
  0xee   : > { %836 = vmatpush1.msra.mxu1 %v543_v60  ;;  %907 = vmatpush1.msra.mxu0 %v545_v61  ;;  %v1139_v60 = vld [vmem:[%s5575_s4 + $0x38] sm:$0xff]  ;;  %v2856_v61 = vld [vmem:[%s5575_s4 + $0xb0] sm:$0xff] }
  0xef   : > { %837 = vmatprep.subr.mxu1 %v534_v62  ;;  %908 = vmatprep.subr.mxu0 %v536_v63  ;;  %v1138_v62 = vld [vmem:[%s5575_s4 + $0x30] sm:$0xff]  ;;  %v2855_v63 = vld [vmem:[%s5575_s4 + $0xa8] sm:$0xff] }
  0xf0   : > { %838 = vmatpush1.msra.mxu1 %v533_v0  ;;  %909 = vmatpush1.msra.mxu0 %v535_v1  ;;  %v1137_v0 = vld [vmem:[%s5575_s4 + $0x28] sm:$0xff]  ;;  %v2854_v1 = vld [vmem:[%s5575_s4 + $0xa0] sm:$0xff] }
  0xf1   : > { %839 = vmatprep.subr.mxu1 %v524_v3  ;;  %910 = vmatprep.subr.mxu0 %v526_v4  ;;  %v1136_v3 = vld [vmem:[%s5575_s4 + $0x20] sm:$0xff]  ;;  %v2853_v4 = vld [vmem:[%s5575_s4 + $0x98] sm:$0xff] }
  0xf2   : > { %840 = vmatpush1.msra.mxu1 %v523_v5  ;;  %911 = vmatpush1.msra.mxu0 %v525_v6  ;;  %v1135_v5 = vld [vmem:[%s5575_s4 + $0x18] sm:$0xff]  ;;  %v2852_v6 = vld [vmem:[%s5575_s4 + $0x90] sm:$0xff] }
  0xf3   : > { %841 = vmatprep.subr.mxu1 %v514_v7  ;;  %912 = vmatprep.subr.mxu0 %v516_v8  ;;  %v1134_v7 = vld [vmem:[%s5575_s4 + $0x10] sm:$0xff]  ;;  %v2851_v8 = vld [vmem:[%s5575_s4 + $0x88] sm:$0xff] }
  0xf4   : > { %842 = vmatpush1.msra.mxu1 %v513_v9  ;;  %875 = vmatprep.mubr.f32.mxu1 %v3732_v2  ;;  %v1133_v9 = vld [vmem:[%s5575_s4 + $0x8] sm:$0xff] }
  0xf5   : > { %913 = vmatpush1.msra.mxu0 %v515_v10  ;;  %946 = vmatprep.mubr.f32.mxu0 %v3732_v2  ;;  %v2850_v10 = vld [vmem:[%s5575_s4 + $0x80] sm:$0xff] }
  0xf6   : > { %876 = vmatmul.mubr.f32.vlgmr.msra.gmra.mxu1 %v4042_v11  ;;  %947 = vmatmul.mubr.f32.vlgmr.msra.gmra.mxu0 %v4042_v11 }
  0xf7   : > { %953 = vmatprep.subr.mxu1 %v668_v12  ;;  %1017 = vmatprep.mubr.f32.mxu1 %v3732_v2  ;;  %v1132_v12 = vld [vmem:[%s5575_s4] sm:$0xff] }
  0xf8   : > { %954 = vmatpush1.msra.mxu1 %v667_v13  ;;  %3200 = vmatprep.subr.mxu0 %v3732_v2 }
  0xf9   : > { %955 = vmatprep.subr.mxu1 %v658_v14  ;;  %3232 = vmatprep.mubr.msk.f32.mxu0 %vm3733_vm0, %v3732_v2 }
  0xfa   : > { %956 = vmatpush1.msra.mxu1 %v657_v15  ;;  %3201 = vmatpush3.msra.mxu0 %v2865_v44  ;;  %v3734_v15 = vmov 1966171168  }
  0xfb   : > { %957 = vmatprep.subr.mxu1 %v648_v16  ;;  %3202 = vmatprep.subr.mxu0 %v3732_v2  ;;  %v1049_v16 = vunpack.c.l.s4 %v3734_v15  ;;  %v2870_v15 = vld [vmem:[%s5575_s4 + $0x120] sm:$0xff] }
  0xfc   : > { %958 = vmatpush1.msra.mxu1 %v647_v17  ;;  %3203 = vmatpush3.msra.mxu0 %v2864_v46  ;;  %v1051_v17 = vlaneseq }
  0xfd   : > { %959 = vmatprep.subr.mxu1 %v638_v18  ;;  %3204 = vmatprep.subr.mxu0 %v3732_v2 }
  0xfe   : > { %960 = vmatpush1.msra.mxu1 %v637_v19  ;;  %3205 = vmatpush3.msra.mxu0 %v2863_v47  ;;  %v2881_v47 = vld [vmem:[%s5575_s4 + $0x178] sm:$0xff] }
  0xff   : > { %961 = vmatprep.subr.mxu1 %v628_v20  ;;  %3206 = vmatprep.subr.mxu0 %v3732_v2 }
 0x100   : > { %962 = vmatpush1.msra.mxu1 %v627_v21  ;;  %3207 = vmatpush3.msra.mxu0 %v2862_v49  ;;  %v1050_v21 = vunpack.c.0.s8 %v1049_v16  ;;  %v2886_v16 = vld [vmem:[%s5575_s4 + $0x1a0] sm:$0xff] }
 0x101   : > { %963 = vmatprep.subr.mxu1 %v618_v22  ;;  %3208 = vmatprep.subr.mxu0 %v3732_v2  ;;  %v4468_v22 = vshrl.u32 %v1051_v17, 7  ;;  %v2869_v17 = vld [vmem:[%s5575_s4 + $0x118] sm:$0xff] }
 0x102   : > { %964 = vmatpush1.msra.mxu1 %v617_v23  ;;  %3209 = vmatpush3.msra.mxu0 %v2861_v51  ;;  %v2880_v51 = vld [vmem:[%s5575_s4 + $0x170] sm:$0xff] }
 0x103   : > { %965 = vmatprep.subr.mxu1 %v608_v24  ;;  %3210 = vmatprep.subr.mxu0 %v3732_v2 }
 0x104   : > { %966 = vmatpush1.msra.mxu1 %v607_v25  ;;  %3211 = vmatpush3.msra.mxu0 %v2860_v53  ;;  %v2879_v53 = vld [vmem:[%s5575_s4 + $0x168] sm:$0xff] }
 0x105   : > { %967 = vmatprep.subr.mxu1 %v598_v26  ;;  %3212 = vmatprep.subr.mxu0 %v3732_v2 }
 0x106   : > { %968 = vmatpush1.msra.mxu1 %v597_v27  ;;  %3213 = vmatpush3.msra.mxu0 %v2859_v55  ;;  %v4471_v27 = vsub.s32 %v1050_v21, %v4468_v22  ;;  %v2878_v55 = vld [vmem:[%s5575_s4 + $0x160] sm:$0xff]  ;;  %v2867_v21 = vld [vmem:[%s5575_s4 + $0x108] sm:$0xff] }
 0x107   : > { %969 = vmatprep.subr.mxu1 %v588_v28  ;;  %3214 = vmatprep.subr.mxu0 %v3732_v2 }
 0x108   : > { %970 = vmatpush1.msra.mxu1 %v587_v29  ;;  %3215 = vmatpush3.msra.mxu0 %v2858_v57  ;;  %v2877_v57 = vld [vmem:[%s5575_s4 + $0x158] sm:$0xff] }
 0x109   : > { %971 = vmatprep.subr.mxu1 %v578_v30  ;;  %3216 = vmatprep.subr.mxu0 %v3732_v2 }
 0x10a   : > { %972 = vmatpush1.msra.mxu1 %v577_v31  ;;  %3217 = vmatpush3.msra.mxu0 %v2857_v59  ;;  %v2876_v59 = vld [vmem:[%s5575_s4 + $0x150] sm:$0xff] }
 0x10b   : > { %973 = vmatprep.subr.mxu1 %v568_v32  ;;  %3218 = vmatprep.subr.mxu0 %v3732_v2 }
 0x10c   : > { %974 = vmatpush1.msra.mxu1 %v567_v33  ;;  %3219 = vmatpush3.msra.mxu0 %v2856_v61 }
 0x10d   : > { %975 = vmatprep.subr.mxu1 %v558_v34  ;;  %3220 = vmatprep.subr.mxu0 %v3732_v2 }
 0x10e   : > { %976 = vmatpush1.msra.mxu1 %v557_v35  ;;  %3221 = vmatpush3.msra.mxu0 %v2855_v63  ;;  %v2891_v63 = vld [vmem:[%s5575_s4 + $0x1c8] sm:$0xff] }
 0x10f   : > { %977 = vmatprep.subr.mxu1 %v548_v36  ;;  %3222 = vmatprep.subr.mxu0 %v3732_v2 }
 0x110   : > { %978 = vmatpush1.msra.mxu1 %v547_v37  ;;  %3223 = vmatpush3.msra.mxu0 %v2854_v1  ;;  %v2874_v1 = vld [vmem:[%s5575_s4 + $0x140] sm:$0xff] }
 0x111   : > { %979 = vmatprep.subr.mxu1 %v538_v38  ;;  %3224 = vmatprep.subr.mxu0 %v3732_v2 }
 0x112   : > { %980 = vmatpush1.msra.mxu1 %v537_v39  ;;  %3225 = vmatpush3.msra.mxu0 %v2853_v4 }
 0x113   : > { %981 = vmatprep.subr.mxu1 %v528_v40  ;;  %3226 = vmatprep.subr.mxu0 %v3732_v2 }
 0x114   : > { %982 = vmatpush1.msra.mxu1 %v527_v41  ;;  %3227 = vmatpush3.msra.mxu0 %v2852_v6  ;;  %v2873_v6 = vld [vmem:[%s5575_s4 + $0x138] sm:$0xff] }
 0x115   : > { %983 = vmatprep.subr.mxu1 %v518_v42  ;;  %3228 = vmatprep.subr.mxu0 %v3732_v2 }
 0x116   : > { %984 = vmatpush1.msra.mxu1 %v517_v43  ;;  %3229 = vmatpush3.msra.mxu0 %v2851_v8 }
 0x117   : > { %1018 = vmatmul.mubr.f32.vlgmr.msra.gmra.mxu1 %v4042_v11  ;;  %3235 = vmatprep.subr.mxu1 %v3732_v2  ;;  %v1146_v11 = vld [vmem:[%s5575_s4 + $0x70] sm:$0xff] }
 0x118   : > { %3267 = vmatprep.mubr.msk.f32.mxu1 %vm3733_vm0, %v3732_v2  ;;  %3236 = vmatpush3.msra.mxu1 %v1147_v45 }
 0x119   : > { %3237 = vmatprep.subr.mxu1 %v3732_v2  ;;  %3230 = vmatprep.subr.mxu0 %v3732_v2 }
 0x11a   : > { %3238 = vmatpush3.msra.mxu1 %v1146_v11  ;;  %3231 = vmatpush3.msra.mxu0 %v2850_v10  ;;  %v2888_v10 = vld [vmem:[%s5575_s4 + $0x1b0] sm:$0xff] }
 0x11b   : > { %3239 = vmatprep.subr.mxu1 %v3732_v2  ;;  %3270 = vmatprep.subr.mxu0 %v3732_v2 }
 0x11c   : > { %3240 = vmatpush3.msra.mxu1 %v1145_v48  ;;  %v2897_v48 = vld [vmem:[%s5575_s4 + $0x1f8] sm:$0xff] }
 0x11d   : > { %3241 = vmatprep.subr.mxu1 %v3732_v2 }
 0x11e   : > { %3242 = vmatpush3.msra.mxu1 %v1144_v50 }
 0x11f   : > { %3243 = vmatprep.subr.mxu1 %v3732_v2 }
 0x120   : > { %3244 = vmatpush3.msra.mxu1 %v1143_v52  ;;  %v2896_v52 = vld [vmem:[%s5575_s4 + $0x1f0] sm:$0xff] }
 0x121   : > { %3245 = vmatprep.subr.mxu1 %v3732_v2 }
 0x122   : > { %3246 = vmatpush3.msra.mxu1 %v1142_v54  ;;  %v2895_v54 = vld [vmem:[%s5575_s4 + $0x1e8] sm:$0xff] }
 0x123   : > { %3247 = vmatprep.subr.mxu1 %v3732_v2 }
 0x124   : > { %3248 = vmatpush3.msra.mxu1 %v1141_v56  ;;  %v2894_v56 = vld [vmem:[%s5575_s4 + $0x1e0] sm:$0xff] }
 0x125   : > { %3249 = vmatprep.subr.mxu1 %v3732_v2 }
 0x126   : > { %3250 = vmatpush3.msra.mxu1 %v1140_v58  ;;  %v2893_v58 = vld [vmem:[%s5575_s4 + $0x1d8] sm:$0xff] }
 0x127   : > { %3251 = vmatprep.subr.mxu1 %v3732_v2 }
 0x128   : > { %3252 = vmatpush3.msra.mxu1 %v1139_v60  ;;  %v2892_v60 = vld [vmem:[%s5575_s4 + $0x1d0] sm:$0xff] }
 0x129   : > { %3253 = vmatprep.subr.mxu1 %v3732_v2 }
 0x12a   : > { %3254 = vmatpush3.msra.mxu1 %v1138_v62  ;;  %v2875_v62 = vld [vmem:[%s5575_s4 + $0x148] sm:$0xff] }
 0x12b   : > { %3255 = vmatprep.subr.mxu1 %v3732_v2 }
 0x12c   : > { %3256 = vmatpush3.msra.mxu1 %v1137_v0 }
 0x12d   : > { %3257 = vmatprep.subr.mxu1 %v3732_v2 }
 0x12e   : > { %3258 = vmatpush3.msra.mxu1 %v1136_v3  ;;  %v2890_v3 = vld [vmem:[%s5575_s4 + $0x1c0] sm:$0xff] }
 0x12f   : > { %3259 = vmatprep.subr.mxu1 %v3732_v2 }
 0x130   : > { %3260 = vmatpush3.msra.mxu1 %v1135_v5 }
 0x131   : > { %3261 = vmatprep.subr.mxu1 %v3732_v2 }
 0x132   : > { %3262 = vmatpush3.msra.mxu1 %v1134_v7  ;;  %v2889_v7 = vld [vmem:[%s5575_s4 + $0x1b8] sm:$0xff] }
 0x133   : > { %3263 = vmatprep.subr.mxu1 %v3732_v2 }
 0x134   : > { %3264 = vmatpush3.msra.mxu1 %v1133_v9  ;;  %v2872_v9 = vld [vmem:[%s5575_s4 + $0x130] sm:$0xff] }
 0x135   : > { %3265 = vmatprep.subr.mxu1 %v3732_v2 }
 0x136   : > { %3266 = vmatpush3.msra.mxu1 %v1132_v12 }
 0x137   : > { %3305 = vmatprep.subr.mxu1 %v3732_v2 }
 0x195   : > { %v735_v13 = vpop.f32.mrf.mxu1  ;;  %v806_v14 = vpop.f32.mrf.mxu0 }
 0x196   : > { %v1024_v24 = vmax.f32 %v735_v13, 0.0  ;;  %v1026_v25 = vmax.f32 %v806_v14, 0.0  ;;  %v2871_v13 = vld [vmem:[%s5575_s4 + $0x128] sm:$0xff] }
 0x197   : > { %v737_v18 = vpop.f32.mrf.mxu1  ;;  %v808_v19 = vpop.f32.mrf.mxu0  ;;  %v2887_v14 = vld [vmem:[%s5575_s4 + $0x1a8] sm:$0xff] }
 0x198   : > { %v1025_v20 = vmax.f32 %v737_v18, 0.0  ;;  %v1027_v23 = vmax.f32 %v808_v19, 0.0  ;;  %v2885_v18 = vld [vmem:[%s5575_s4 + $0x198] sm:$0xff]  ;;  %v2868_v19 = vld [vmem:[%s5575_s4 + $0x110] sm:$0xff] }
 0x19a   : > { %v1044_v26 = vcombine.low %v1024_v24, %v1025_v20  ;;  %v1045_v28 = vcombine.low %v1026_v25, %v1027_v23  ;;  %v2884_v20 = vld [vmem:[%s5575_s4 + $0x190] sm:$0xff]  ;;  %v2883_v23 = vld [vmem:[%s5575_s4 + $0x188] sm:$0xff]  ;;  %v2866_v24 = vld [vmem:[%s5575_s4 + $0x100] sm:$0xff] }
 0x19b   : > { %v2882_v25 = vld [vmem:[%s5575_s4 + $0x180] sm:$0xff] }
 0x19c   : > { %v1054_v31 = vrot.slane %v1044_v26, %v4471_v27  ;;  %v1061_v32 = vrot.slane %v1045_v28, %v4471_v27  ;;  %v2912_v28 = vld [vmem:[%s5575_s4 + $0x270] sm:$0xff] }
 0x19e   : > { %v1076_v41 = vcombine.low %v1054_v31, %v1061_v32  ;;  %v2909_v31 = vld [vmem:[%s5575_s4 + $0x258] sm:$0xff]  ;;  %v2908_v32 = vld [vmem:[%s5575_s4 + $0x250] sm:$0xff] }
 0x1a0   : > { %v1084_v45 = vrot.slane %v1076_v41, %v4471_v27  ;;  %v2899_v41 = vld [vmem:[%s5575_s4 + $0x208] sm:$0xff] }
 0x1b6   : > { %v877_v29 = vpop.f32.mrf.mxu1  ;;  %v948_v30 = vpop.f32.mrf.mxu0 }
 0x1b7   : > { %v1028_v35 = vmax.f32 %v877_v29, 0.0  ;;  %v1030_v36 = vmax.f32 %v948_v30, 0.0  ;;  %v2911_v29 = vld [vmem:[%s5575_s4 + $0x268] sm:$0xff]  ;;  %v2910_v30 = vld [vmem:[%s5575_s4 + $0x260] sm:$0xff] }
 0x1b8   : > { %v879_v33 = vpop.f32.mrf.mxu1  ;;  %v950_v34 = vpop.f32.mrf.mxu0 }
 0x1b9   : > { %v1029_v37 = vmax.f32 %v879_v33, 0.0  ;;  %v1031_v38 = vmax.f32 %v950_v34, 0.0  ;;  %v2907_v33 = vld [vmem:[%s5575_s4 + $0x248] sm:$0xff]  ;;  %v2906_v34 = vld [vmem:[%s5575_s4 + $0x240] sm:$0xff] }
 0x1bb   : > { %v1046_v39 = vcombine.low %v1028_v35, %v1029_v37  ;;  %v1047_v40 = vcombine.low %v1030_v36, %v1031_v38  ;;  %v2905_v35 = vld [vmem:[%s5575_s4 + $0x238] sm:$0xff]  ;;  %v2904_v36 = vld [vmem:[%s5575_s4 + $0x230] sm:$0xff]  ;;  %v2903_v37 = vld [vmem:[%s5575_s4 + $0x228] sm:$0xff] }
 0x1bc   : > { %v2902_v38 = vld [vmem:[%s5575_s4 + $0x220] sm:$0xff] }
 0x1bd   : > { %v1068_v42 = vrot.slane %v1046_v39, %v4471_v27  ;;  %v1075_v43 = vrot.slane %v1047_v40, %v4471_v27  ;;  %v2901_v39 = vld [vmem:[%s5575_s4 + $0x218] sm:$0xff]  ;;  %v2900_v40 = vld [vmem:[%s5575_s4 + $0x210] sm:$0xff] }
 0x1bf   : > { %v1077_v44 = vcombine.low %v1068_v42, %v1075_v43  ;;  %v2898_v42 = vld [vmem:[%s5575_s4 + $0x200] sm:$0xff] }
 0x1c1   : > { %v1091_v46 = vrot.slane %v1077_v44, %v4471_v27  ;;  %v2929_v44 = vld [vmem:[%s5576_s5 + $0xf8] sm:$0xff] }
 0x1c3   : > { %v4479_v11 = vcombine.low %v1084_v45, %v1091_v46  ;;  %v1594_v45 = vld [vmem:[%s5576_s5 + $0x78] sm:$0xff]  ;;  %v2928_v46 = vld [vmem:[%s5576_s5 + $0xf0] sm:$0xff] }
 0x1c5   : > { %1110 = vst [vmem:[#allocation2 + $0x2] sm:$0xff] %v4479_v11 }
 0x1cc   : > { %v1148_v49 = vld [vmem:[#allocation2 + $0x1] sm:$0xff] }
 0x1cd   : > { %v1131_v50 = vld [vmem:[#allocation2] sm:$0xff]  ;;  %3233 = vmatmul.mubr.f32.vlgmr.msra.gmra.mxu0 %v1148_v49  ;;  %v1592_v49 = vld [vmem:[%s5576_s5 + $0x68] sm:$0xff] }
 0x1ce   : > { %3268 = vmatmul.mubr.f32.vlgmr.msra.gmra.mxu1 %v1131_v50  ;;  %3271 = vmatpush3.msra.mxu0 %v2881_v47  ;;  %v1593_v47 = vld [vmem:[%s5576_s5 + $0x70] sm:$0xff]  ;;  %v2926_v50 = vld [vmem:[%s5576_s5 + $0xe0] sm:$0xff] }
 0x1cf   : > { %3306 = vmatpush3.msra.mxu1 %v2897_v48  ;;  %3272 = vmatprep.subr.mxu0 %v3732_v2  ;;  %v2927_v48 = vld [vmem:[%s5576_s5 + $0xe8] sm:$0xff] }
 0x1d0   : > { %3307 = vmatprep.subr.mxu1 %v3732_v2  ;;  %3273 = vmatpush3.msra.mxu0 %v2880_v51  ;;  %v1591_v51 = vld [vmem:[%s5576_s5 + $0x60] sm:$0xff] }
 0x1d1   : > { %3308 = vmatpush3.msra.mxu1 %v2896_v52  ;;  %3274 = vmatprep.subr.mxu0 %v3732_v2  ;;  %v2925_v52 = vld [vmem:[%s5576_s5 + $0xd8] sm:$0xff] }
 0x1d2   : > { %3309 = vmatprep.subr.mxu1 %v3732_v2  ;;  %3275 = vmatpush3.msra.mxu0 %v2879_v53  ;;  %v1590_v53 = vld [vmem:[%s5576_s5 + $0x58] sm:$0xff] }
 0x1d3   : > { %3310 = vmatpush3.msra.mxu1 %v2895_v54  ;;  %3276 = vmatprep.subr.mxu0 %v3732_v2  ;;  %v2924_v54 = vld [vmem:[%s5576_s5 + $0xd0] sm:$0xff] }
 0x1d4   : > { %3311 = vmatprep.subr.mxu1 %v3732_v2  ;;  %3277 = vmatpush3.msra.mxu0 %v2878_v55  ;;  %v1589_v55 = vld [vmem:[%s5576_s5 + $0x50] sm:$0xff] }
 0x1d5   : > { %3312 = vmatpush3.msra.mxu1 %v2894_v56  ;;  %3278 = vmatprep.subr.mxu0 %v3732_v2  ;;  %v2923_v56 = vld [vmem:[%s5576_s5 + $0xc8] sm:$0xff] }
 0x1d6   : > { %3313 = vmatprep.subr.mxu1 %v3732_v2  ;;  %3279 = vmatpush3.msra.mxu0 %v2877_v57  ;;  %v1588_v57 = vld [vmem:[%s5576_s5 + $0x48] sm:$0xff] }
 0x1d7   : > { %3314 = vmatpush3.msra.mxu1 %v2893_v58  ;;  %v1019_v61 = vpop.f32.mrf.mxu1  ;;  %3280 = vmatprep.subr.mxu0 %v3732_v2  ;;  %v2922_v58 = vld [vmem:[%s5576_s5 + $0xc0] sm:$0xff] }
 0x1d8   : > { %3315 = vmatprep.subr.mxu1 %v3732_v2  ;;  %3281 = vmatpush3.msra.mxu0 %v2876_v59  ;;  %v1032_v4 = vmax.f32 %v1019_v61, 0.0  ;;  %v1587_v59 = vld [vmem:[%s5576_s5 + $0x40] sm:$0xff]  ;;  %v1586_v61 = vld [vmem:[%s5576_s5 + $0x38] sm:$0xff] }
 0x1d9   : > { %3316 = vmatpush3.msra.mxu1 %v2892_v60  ;;  %v1021_v0 = vpop.f32.mrf.mxu1  ;;  %3282 = vmatprep.subr.mxu0 %v3732_v2  ;;  %v2921_v60 = vld [vmem:[%s5576_s5 + $0xb8] sm:$0xff] }
 0x1da   : > { %3317 = vmatprep.subr.mxu1 %v3732_v2  ;;  %v1033_v5 = vmax.f32 %v1021_v0, 0.0  ;;  %3283 = vmatpush3.msra.mxu0 %v2875_v62  ;;  %v2920_v62 = vld [vmem:[%s5576_s5 + $0xb0] sm:$0xff]  ;;  %v2918_v0 = vld [vmem:[%s5576_s5 + $0xa0] sm:$0xff] }
 0x1db   : > { %3318 = vmatpush3.msra.mxu1 %v2891_v63  ;;  %3284 = vmatprep.subr.mxu0 %v3732_v2  ;;  %v2919_v63 = vld [vmem:[%s5576_s5 + $0xa8] sm:$0xff] }
 0x1dc   : > { %3319 = vmatprep.subr.mxu1 %v3732_v2  ;;  %v1093_v8 = vcombine.low %v1032_v4, %v1033_v5  ;;  %3285 = vmatpush3.msra.mxu0 %v2874_v1  ;;  %v2917_v1 = vld [vmem:[%s5576_s5 + $0x98] sm:$0xff]  ;;  %v1585_v4 = vld [vmem:[%s5576_s5 + $0x30] sm:$0xff]  ;;  %v2915_v5 = vld [vmem:[%s5576_s5 + $0x88] sm:$0xff] }
 0x1dd   : > { %3320 = vmatpush3.msra.mxu1 %v2890_v3  ;;  %3286 = vmatprep.subr.mxu0 %v3732_v2  ;;  %v2916_v3 = vld [vmem:[%s5576_s5 + $0x90] sm:$0xff] }
 0x1de   : > { %3321 = vmatprep.subr.mxu1 %v3732_v2  ;;  %v1100_v12 = vrot.slane %v1093_v8, %v4471_v27  ;;  %3287 = vmatpush3.msra.mxu0 %v2873_v6  ;;  %v2913_v27 = vld [vmem:[%s5575_s4 + $0x278] sm:$0xff]  ;;  %v1584_v6 = vld [vmem:[%s5576_s5 + $0x28] sm:$0xff]  ;;  %v1583_v8 = vld [vmem:[%s5576_s5 + $0x20] sm:$0xff] }
 0x1df   : > { %3322 = vmatpush3.msra.mxu1 %v2889_v7  ;;  %3288 = vmatprep.subr.mxu0 %v3732_v2  ;;  %v2914_v7 = vld [vmem:[%s5576_s5 + $0x80] sm:$0xff] }
 0x1e0   : > { %3323 = vmatprep.subr.mxu1 %v3732_v2  ;;  %2849 = vst.sshfl [vmem:[#allocation2 + $0xa] sm:$0x5 pattern:$0x73625140] %v1100_v12  ;;  %3289 = vmatpush3.msra.mxu0 %v2872_v9  ;;  %v1582_v9 = vld [vmem:[%s5576_s5 + $0x18] sm:$0xff]  ;;  %v1580_v12 = vld [vmem:[%s5576_s5 + $0x8] sm:$0xff] }
 0x1e1   : > { %3324 = vmatpush3.msra.mxu1 %v2888_v10  ;;  %3290 = vmatprep.subr.mxu0 %v3732_v2  ;;  %v1581_v10 = vld [vmem:[%s5576_s5 + $0x10] sm:$0xff] }
 0x1e2   : > { %3325 = vmatprep.subr.mxu1 %v3732_v2  ;;  %3291 = vmatpush3.msra.mxu0 %v2871_v13  ;;  %v1579_v13 = vld [vmem:[%s5576_s5] sm:$0xff] }
 0x1e3   : > { %3326 = vmatpush3.msra.mxu1 %v2887_v14  ;;  %3292 = vmatprep.subr.mxu0 %v3732_v2 }
 0x1e4   : > { %3327 = vmatprep.subr.mxu1 %v3732_v2  ;;  %3293 = vmatpush3.msra.mxu0 %v2870_v15 }
 0x1e5   : > { %3328 = vmatpush3.msra.mxu1 %v2886_v16  ;;  %3294 = vmatprep.subr.mxu0 %v3732_v2 }
 0x1e6   : > { %3329 = vmatprep.subr.mxu1 %v3732_v2  ;;  %3295 = vmatpush3.msra.mxu0 %v2869_v17 }
 0x1e7   : > { %3330 = vmatpush3.msra.mxu1 %v2885_v18  ;;  %3296 = vmatprep.subr.mxu0 %v3732_v2  ;;  %v1395_v26 = vld [vmem:[#allocation2 + $0x3] sm:$0xff] }
 0x1e8   : > { %3331 = vmatprep.subr.mxu1 %v3732_v2  ;;  %3297 = vmatpush3.msra.mxu0 %v2868_v19  ;;  %v1484_v43 = vld [vmem:[#allocation2 + $0x4] sm:$0xff] }
 0x1e9   : > { %3332 = vmatpush3.msra.mxu1 %v2884_v20  ;;  %3298 = vmatprep.subr.mxu0 %v3732_v2 }
 0x1ea   : > { %3333 = vmatprep.subr.mxu1 %v3732_v2  ;;  %3299 = vmatpush3.msra.mxu0 %v2867_v21 }
 0x1eb   : > { %3334 = vmatpush3.msra.mxu1 %v2883_v23  ;;  %3300 = vmatprep.subr.mxu0 %v3732_v2 }
 0x1ec   : > { %3335 = vmatprep.subr.mxu1 %v3732_v2  ;;  %3301 = vmatpush3.msra.mxu0 %v2866_v24  ;;  %v4814_v23 = vmul.u32.u64.low 3435973837, %v4468_v22  ;;  %v4815_v24 = vmul.u32.u64.high 3435973837, %v4468_v22, %v4814_v23 }
 0x1ed   : > { %3302 = vmatprep.mubr.msk.f32.mxu0 %vm3733_vm0, %v3732_v2  ;;  %3336 = vmatpush3.msra.mxu1 %v2882_v25  ;;  %v1876_v23 = vld [vmem:[%s5578_s7 + $0x58] sm:$0xff] }
 0x1ee   : > { %3337 = vmatprep.mubr.msk.f32.mxu1 %vm3733_vm0, %v3732_v2  ;;  %3303 = vmatmul.mubr.f32.vlgmr.msra.gmra.mxu0 %v4479_v11  ;;  %v1120_v25 = vshrl.u32 %v4815_v24, 3  ;;  %v1875_v24 = vld [vmem:[%s5578_s7 + $0x50] sm:$0xff] }
 0x1ef   : > { %3338 = vmatmul.mubr.f32.vlgmr.msra.gmra.mxu1 %v1395_v26  ;;  %3340 = vmatprep.subr.mxu0 %v3732_v2 }
 0x1f0   : > { %3372 = vmatprep.mubr.msk.f32.mxu0 %vm3733_vm0, %v3732_v2  ;;  %3341 = vmatpush3.msra.mxu0 %v2913_v27  ;;  %v1121_v26 = vmul.u32 10, %v1120_v25  ;;  %v1874_v25 = vld [vmem:[%s5578_s7 + $0x48] sm:$0xff] }
 0x1f1   : > { %3375 = vmatprep.subr.mxu1 %v3732_v2  ;;  %3342 = vmatprep.subr.mxu0 %v3732_v2 }
 0x1f2   : > { %3407 = vmatprep.mubr.msk.f32.mxu1 %vm3733_vm0, %v3732_v2  ;;  %3343 = vmatpush3.msra.mxu0 %v2912_v28  ;;  %v1122_v27 = vsub.s32 %v4468_v22, %v1121_v26  ;;  %v2945_v22 = vld [vmem:[%s5576_s5 + $0x178] sm:$0xff]  ;;  %v1873_v26 = vld [vmem:[%s5578_s7 + $0x40] sm:$0xff] }
 0x1f3   : > { %3344 = vmatprep.subr.mxu0 %v3732_v2  ;;  %3376 = vmatpush3.msra.mxu1 %v2929_v44  ;;  %v2940_v44 = vld [vmem:[%s5576_s5 + $0x150] sm:$0xff] }
 0x1f4   : > { %3345 = vmatpush3.msra.mxu0 %v2911_v29  ;;  %3377 = vmatprep.subr.mxu1 %v3732_v2  ;;  %vm1125_vm2 = vcmp.ne.s32.totalorder %v1122_v27, 0  ;;  %vm1126_vm3 = vcmp.lt.s32.totalorder %v1122_v27, 0 }
 0x1f5   : > { %3346 = vmatprep.subr.mxu0 %v3732_v2  ;;  %3378 = vmatpush3.msra.mxu1 %v2928_v46  ;;  %vm1127_vm4 = vmand %vm1126_vm3, %vm1125_vm2  ;;  %v2938_v46 = vld [vmem:[%s5576_s5 + $0x140] sm:$0xff] }
 0x1f6   : > { %3347 = vmatpush3.msra.mxu0 %v2910_v30  ;;  %3379 = vmatprep.subr.mxu1 %v3732_v2  ;;  %v1128_v30 = vadd.s32 10, %v1122_v27 }
 0x1f7   : > { %3348 = vmatprep.subr.mxu0 %v3732_v2  ;;  %3380 = vmatpush3.msra.mxu1 %v2927_v48  ;;  %v2936_v48 = vld [vmem:[%s5576_s5 + $0x130] sm:$0xff] }
 0x1f8   : > { %3349 = vmatpush3.msra.mxu0 %v2909_v31  ;;  %3381 = vmatprep.subr.mxu1 %v3732_v2 }
 0x1f9   : > { %3350 = vmatprep.subr.mxu0 %v3732_v2  ;;  %3382 = vmatpush3.msra.mxu1 %v2926_v50  ;;  %v2934_v50 = vld [vmem:[%s5576_s5 + $0x120] sm:$0xff] }
 0x1fa   : > { %3351 = vmatpush3.msra.mxu0 %v2908_v32  ;;  %3383 = vmatprep.subr.mxu1 %v3732_v2  ;;  %v1129_v32 = vsel %vm1127_vm4, %v1128_v30, %v1122_v27  ;;  %v1872_v27 = vld [vmem:[%s5578_s7 + $0x38] sm:$0xff]  ;;  %v1870_v30 = vld [vmem:[%s5578_s7 + $0x28] sm:$0xff] }
 0x1fb   : > { %3352 = vmatprep.subr.mxu0 %v3732_v2  ;;  %3384 = vmatpush3.msra.mxu1 %v2925_v52  ;;  %vm4819_vm5 = vcmp.lt.s32.totalorder %v1129_v32, 8  ;;  %v2932_v52 = vld [vmem:[%s5576_s5 + $0x110] sm:$0xff] }
 0x1fc   : > { %3353 = vmatpush3.msra.mxu0 %v2907_v33  ;;  %3385 = vmatprep.subr.mxu1 %v3732_v2  ;;  %v1975_v32 = vld [vmem:[%s5579_s8 + $0x30] sm:$0xff] }
 0x1fd   : > { %3354 = vmatprep.subr.mxu0 %v3732_v2  ;;  %3386 = vmatpush3.msra.mxu1 %v2924_v54  ;;  %v2930_v54 = vld [vmem:[%s5576_s5 + $0x100] sm:$0xff] }
 0x1fe   : > { %3355 = vmatpush3.msra.mxu0 %v2906_v34  ;;  %3387 = vmatprep.subr.mxu1 %v3732_v2 }
 0x1ff   : > { %3356 = vmatprep.subr.mxu0 %v3732_v2  ;;  %3388 = vmatpush3.msra.mxu1 %v2923_v56  ;;  %v1896_v56 = vld [vmem:[%s5578_s7 + $0xf8] sm:$0xff] }
 0x200   : > { %3357 = vmatpush3.msra.mxu0 %v2905_v35  ;;  %3389 = vmatprep.subr.mxu1 %v3732_v2  ;;  %v2569_v35 = vld [vmem:[%s5583_s12 + $0x68] sm:$0xff] }
 0x201   : > { %3358 = vmatprep.subr.mxu0 %v3732_v2  ;;  %3390 = vmatpush3.msra.mxu1 %v2922_v58  ;;  %v1894_v58 = vld [vmem:[%s5578_s7 + $0xe8] sm:$0xff] }
 0x202   : > { %3359 = vmatpush3.msra.mxu0 %v2904_v36  ;;  %3391 = vmatprep.subr.mxu1 %v3732_v2 }
 0x203   : > { %3360 = vmatprep.subr.mxu0 %v3732_v2  ;;  %3392 = vmatpush3.msra.mxu1 %v2921_v60  ;;  %v1984_v60 = vld [vmem:[%s5579_s8 + $0x78] sm:$0xff] }
 0x204   : > { %3361 = vmatpush3.msra.mxu0 %v2903_v37  ;;  %3393 = vmatprep.subr.mxu1 %v3732_v2 }
 0x205   : > { %3362 = vmatprep.subr.mxu0 %v3732_v2  ;;  %3394 = vmatpush3.msra.mxu1 %v2920_v62  ;;  %v1983_v62 = vld [vmem:[%s5579_s8 + $0x70] sm:$0xff] }
 0x206   : > { %3363 = vmatpush3.msra.mxu0 %v2902_v38  ;;  %3395 = vmatprep.subr.mxu1 %v3732_v2 }
 0x207   : > { %3364 = vmatprep.subr.mxu0 %v3732_v2  ;;  %3396 = vmatpush3.msra.mxu1 %v2919_v63  ;;  %v1891_v63 = vld [vmem:[%s5578_s7 + $0xd0] sm:$0xff] }
 0x208   : > { %3365 = vmatpush3.msra.mxu0 %v2901_v39  ;;  %3397 = vmatprep.subr.mxu1 %v3732_v2  ;;  %v2944_v39 = vld [vmem:[%s5576_s5 + $0x170] sm:$0xff] }
 0x209   : > { %3366 = vmatprep.subr.mxu0 %v3732_v2  ;;  %3398 = vmatpush3.msra.mxu1 %v2918_v0  ;;  %v1890_v0 = vld [vmem:[%s5578_s7 + $0xc8] sm:$0xff] }
 0x20a   : > { %3367 = vmatpush3.msra.mxu0 %v2900_v40  ;;  %3399 = vmatprep.subr.mxu1 %v3732_v2  ;;  %v2943_v40 = vld [vmem:[%s5576_s5 + $0x168] sm:$0xff] }
 0x20b   : > { %3368 = vmatprep.subr.mxu0 %v3732_v2  ;;  %3400 = vmatpush3.msra.mxu1 %v2917_v1  ;;  %v1982_v1 = vld [vmem:[%s5579_s8 + $0x68] sm:$0xff] }
 0x20c   : > { %3369 = vmatpush3.msra.mxu0 %v2899_v41  ;;  %3401 = vmatprep.subr.mxu1 %v3732_v2  ;;  %v2942_v41 = vld [vmem:[%s5576_s5 + $0x160] sm:$0xff] }
 0x20d   : > { %3370 = vmatprep.subr.mxu0 %v3732_v2  ;;  %3402 = vmatpush3.msra.mxu1 %v2916_v3  ;;  %v1889_v3 = vld [vmem:[%s5578_s7 + $0xc0] sm:$0xff] }
 0x20e   : > { %3371 = vmatpush3.msra.mxu0 %v2898_v42  ;;  %3403 = vmatprep.subr.mxu1 %v3732_v2  ;;  %v2941_v42 = vld [vmem:[%s5576_s5 + $0x158] sm:$0xff] }
 0x20f   : > { %3373 = vmatmul.mubr.f32.vlgmr.msra.gmra.mxu0 %v1484_v43  ;;  %3410 = vmatprep.subr.mxu0 %v3732_v2 }
 0x210   : > { %3442 = vmatprep.mubr.msk.f32.mxu0 %vm3733_vm0, %v3732_v2  ;;  %3411 = vmatpush3.msra.mxu0 %v1594_v45  ;;  %v2939_v45 = vld [vmem:[%s5576_s5 + $0x148] sm:$0xff] }
 0x211   : > { %3412 = vmatprep.subr.mxu0 %v3732_v2  ;;  %3404 = vmatpush3.msra.mxu1 %v2915_v5  ;;  %v1887_v5 = vld [vmem:[%s5578_s7 + $0xb0] sm:$0xff] }
 0x212   : > { %3413 = vmatpush3.msra.mxu0 %v1593_v47  ;;  %3405 = vmatprep.subr.mxu1 %v3732_v2  ;;  %v2937_v47 = vld [vmem:[%s5576_s5 + $0x138] sm:$0xff] }
 0x213   : > { %3414 = vmatprep.subr.mxu0 %v3732_v2  ;;  %3406 = vmatpush3.msra.mxu1 %v2914_v7  ;;  %v1886_v7 = vld [vmem:[%s5578_s7 + $0xa8] sm:$0xff] }
 0x214   : > { %3415 = vmatpush3.msra.mxu0 %v1592_v49  ;;  %3445 = vmatprep.subr.mxu1 %v3732_v2  ;;  %v2935_v49 = vld [vmem:[%s5576_s5 + $0x128] sm:$0xff] }
 0x215   : > { %3416 = vmatprep.subr.mxu0 %v3732_v2 }
 0x216   : > { %3417 = vmatpush3.msra.mxu0 %v1591_v51  ;;  %v2933_v51 = vld [vmem:[%s5576_s5 + $0x118] sm:$0xff] }
 0x217   : > { %3418 = vmatprep.subr.mxu0 %v3732_v2 }
 0x218   : > { %3419 = vmatpush3.msra.mxu0 %v1590_v53  ;;  %v2931_v53 = vld [vmem:[%s5576_s5 + $0x108] sm:$0xff] }
 0x219   : > { %3420 = vmatprep.subr.mxu0 %v3732_v2 }
 0x21a   : > { %3421 = vmatpush3.msra.mxu0 %v1589_v55 }
 0x21b   : > { %3422 = vmatprep.subr.mxu0 %v3732_v2 }
 0x21c   : > { %3423 = vmatpush3.msra.mxu0 %v1588_v57  ;;  %v1895_v57 = vld [vmem:[%s5578_s7 + $0xf0] sm:$0xff] }
 0x21d   : > { %3424 = vmatprep.subr.mxu0 %v3732_v2 }
 0x21e   : > { %3425 = vmatpush3.msra.mxu0 %v1587_v59  ;;  %v1893_v59 = vld [vmem:[%s5578_s7 + $0xe0] sm:$0xff] }
 0x21f   : > { %3426 = vmatprep.subr.mxu0 %v3732_v2 }
 0x220   : > { %3427 = vmatpush3.msra.mxu0 %v1586_v61  ;;  %v1892_v61 = vld [vmem:[%s5578_s7 + $0xd8] sm:$0xff] }
 0x221   : > { %3428 = vmatprep.subr.mxu0 %v3732_v2 }
 0x222   : > { %3429 = vmatpush3.msra.mxu0 %v1585_v4  ;;  %v1888_v4 = vld [vmem:[%s5578_s7 + $0xb8] sm:$0xff] }
 0x223   : > { %3430 = vmatprep.subr.mxu0 %v3732_v2 }
 0x224   : > { %3431 = vmatpush3.msra.mxu0 %v1584_v6  ;;  %v1981_v6 = vld [vmem:[%s5579_s8 + $0x60] sm:$0xff] }
 0x225   : > { %3432 = vmatprep.subr.mxu0 %v3732_v2 }
 0x226   : > { %3433 = vmatpush3.msra.mxu0 %v1583_v8  ;;  %v1885_v8 = vld [vmem:[%s5578_s7 + $0xa0] sm:$0xff] }
 0x227   : > { %3434 = vmatprep.subr.mxu0 %v3732_v2 }
 0x228   : > { %3435 = vmatpush3.msra.mxu0 %v1582_v9  ;;  %v1980_v9 = vld [vmem:[%s5579_s8 + $0x58] sm:$0xff] }
 0x229   : > { %3436 = vmatprep.subr.mxu0 %v3732_v2 }
 0x22a   : > { %3437 = vmatpush3.msra.mxu0 %v1581_v10  ;;  %v1884_v10 = vld [vmem:[%s5578_s7 + $0x98] sm:$0xff] }
 0x22b   : > { %3438 = vmatprep.subr.mxu0 %v3732_v2 }
 0x22c   : > { %3439 = vmatpush3.msra.mxu0 %v1580_v12  ;;  %v1883_v12 = vld [vmem:[%s5578_s7 + $0x90] sm:$0xff] }
 0x22d   : > { %3440 = vmatprep.subr.mxu0 %v3732_v2 }
 0x22e   : > { %3441 = vmatpush3.msra.mxu0 %v1579_v13  ;;  %v1979_v13 = vld [vmem:[%s5579_s8 + $0x50] sm:$0xff] }
 0x22f   : > { %1897 = vmatprep.subr.mxu0 %v1896_v56  ;;  %v1860_v56 = vld [vmem:[%s5577_s6 + $0x60] sm:$0xff] }
 0x28d   : > { %v1232_v14 = vpop.f32.mrf.mxu0 }
 0x28e   : > { %v1302_v15 = vpop.f32.mrf.mxu1 }
 0x28f   : > { %v3234_v16 = vpop.f32.mrf.mxu0  ;;  %v1303_v28 = vadd.f32 %v1302_v15, %v1232_v14  ;;  %v1882_v14 = vld [vmem:[%s5578_s7 + $0x88] sm:$0xff]  ;;  %v1881_v15 = vld [vmem:[%s5578_s7 + $0x80] sm:$0xff] }
 0x290   : > { %v3269_v17 = vpop.f32.mrf.mxu1  ;;  %v1978_v16 = vld [vmem:[%s5579_s8 + $0x48] sm:$0xff] }
 0x291   : > { %v1880_v17 = vld [vmem:[%s5578_s7 + $0x78] sm:$0xff] }
 0x2ae   : > { %v1390_v18 = vpop.f32.mrf.mxu0 }
 0x2af   : > { %v1479_v19 = vpop.f32.mrf.mxu1  ;;  %v1394_v29 = vadd.f32 %v1390_v18, %v1303_v28  ;;  %v1977_v18 = vld [vmem:[%s5579_s8 + $0x40] sm:$0xff]  ;;  %v1871_v28 = vld [vmem:[%s5578_s7 + $0x30] sm:$0xff] }
 0x2b0   : > { %v3304_v20 = vpop.f32.mrf.mxu0 }
 0x2b1   : > { %v3339_v21 = vpop.f32.mrf.mxu1  ;;  %v1483_v31 = vadd.f32 %v1479_v19, %v1394_v29  ;;  %v1879_v19 = vld [vmem:[%s5578_s7 + $0x70] sm:$0xff]  ;;  %v1878_v20 = vld [vmem:[%s5578_s7 + $0x68] sm:$0xff]  ;;  %v1976_v29 = vld [vmem:[%s5579_s8 + $0x38] sm:$0xff] }
 0x2b2   : > { %v1877_v21 = vld [vmem:[%s5578_s7 + $0x60] sm:$0xff] }
 0x2cf   : > { %v1568_v33 = vpop.f32.mrf.mxu0 }
 0x2d0   : > { %v1572_v34 = vadd.f32 %v1568_v33, %v1483_v31  ;;  %v1869_v31 = vld [vmem:[%s5578_s7 + $0x20] sm:$0xff]  ;;  %v1868_v33 = vld [vmem:[%s5578_s7 + $0x18] sm:$0xff] }
 0x2d1   : > { %v3374_v36 = vpop.f32.mrf.mxu0 }
 0x2d2   : > { %v1573_v37 = vmax.f32 %v1572_v34, 0.0  ;;  %v1867_v34 = vld [vmem:[%s5578_s7 + $0x10] sm:$0xff]  ;;  %v1974_v36 = vld [vmem:[%s5579_s8 + $0x28] sm:$0xff] }
 0x2d4   : > { %v1576_v38 = vsel %vm4819_vm5, %v1573_v37, 0.0  ;;  %3718 = vmatmul.mubr.msk.f32.vlgmr.msra.gmra.mxu1 %vm4819_vm5, %v1573_v37  ;;  %v1866_v37 = vld [vmem:[%s5578_s7 + $0x8] sm:$0xff] }
 0x2d5   : > { %1577 = vst [vmem:[#allocation3 + $0x2] sm:$0xff] %v1576_v38  ;;  %3446 = vmatpush3.msra.mxu1 %v2945_v22  ;;  %3477 = vmatprep.mubr.msk.f32.mxu1 %vm3733_vm0, %v3732_v2  ;;  %v1865_v22 = vld [vmem:[%s5578_s7] sm:$0xff] }
 0x2d6   : > { %3447 = vmatprep.subr.mxu1 %v3732_v2  ;;  %v1973_v38 = vld [vmem:[%s5579_s8 + $0x20] sm:$0xff] }
 0x2d7   : > { %3448 = vmatpush3.msra.mxu1 %v2944_v39  ;;  %v1972_v39 = vld [vmem:[%s5579_s8 + $0x18] sm:$0xff] }
 0x2d8   : > { %3449 = vmatprep.subr.mxu1 %v3732_v2 }
 0x2d9   : > { %3450 = vmatpush3.msra.mxu1 %v2943_v40  ;;  %v1971_v40 = vld [vmem:[%s5579_s8 + $0x10] sm:$0xff] }
 0x2da   : > { %3451 = vmatprep.subr.mxu1 %v3732_v2 }
 0x2db   : > { %3452 = vmatpush3.msra.mxu1 %v2942_v41  ;;  %v1970_v41 = vld [vmem:[%s5579_s8 + $0x8] sm:$0xff] }
 0x2dc   : > { %v1578_v43 = vld [vmem:[#allocation3 + $0x1] sm:$0xff]  ;;  %3453 = vmatprep.subr.mxu1 %v3732_v2 }
 0x2dd   : > { %3443 = vmatmul.mubr.f32.vlgmr.msra.gmra.mxu0 %v1578_v43  ;;  %3454 = vmatpush3.msra.mxu1 %v2941_v42  ;;  %v1753_v55 = vld [vmem:[#allocation3 + $0x3] sm:$0xff]  ;;  %v1969_v42 = vld [vmem:[%s5579_s8] sm:$0xff] }
 0x2de   : > { %1961 = vmatprep.mubr.f32.mxu0 %v3732_v2  ;;  %3455 = vmatprep.subr.mxu1 %v3732_v2 }
 0x2df   : > { %3456 = vmatpush3.msra.mxu1 %v2940_v44  ;;  %1898 = vmatpush1.msra.mxu0 %v1895_v57  ;;  %v1859_v57 = vld [vmem:[%s5577_s6 + $0x58] sm:$0xff] }
 0x2e0   : > { %3457 = vmatprep.subr.mxu1 %v3732_v2  ;;  %1899 = vmatprep.subr.mxu0 %v1894_v58 }
 0x2e1   : > { %3458 = vmatpush3.msra.mxu1 %v2939_v45  ;;  %1900 = vmatpush1.msra.mxu0 %v1893_v59  ;;  %v1858_v59 = vld [vmem:[%s5577_s6 + $0x50] sm:$0xff] }
 0x2e2   : > { %3459 = vmatprep.subr.mxu1 %v3732_v2  ;;  %1901 = vmatprep.subr.mxu0 %v1892_v61  ;;  %v1856_v61 = vld [vmem:[%s5577_s6 + $0x40] sm:$0xff] }
 0x2e3   : > { %3460 = vmatpush3.msra.mxu1 %v2938_v46  ;;  %1902 = vmatpush1.msra.mxu0 %v1891_v63  ;;  %v1854_v63 = vld [vmem:[%s5577_s6 + $0x30] sm:$0xff] }
 0x2e4   : > { %3461 = vmatprep.subr.mxu1 %v3732_v2  ;;  %1903 = vmatprep.subr.mxu0 %v1890_v0  ;;  %v1853_v0 = vld [vmem:[%s5577_s6 + $0x28] sm:$0xff] }
 0x2e5   : > { %3462 = vmatpush3.msra.mxu1 %v2937_v47  ;;  %1904 = vmatpush1.msra.mxu0 %v1889_v3  ;;  %v1851_v3 = vld [vmem:[%s5577_s6 + $0x18] sm:$0xff] }
 0x2e6   : > { %3463 = vmatprep.subr.mxu1 %v3732_v2  ;;  %1905 = vmatprep.subr.mxu0 %v1888_v4  ;;  %v1850_v4 = vld [vmem:[%s5577_s6 + $0x10] sm:$0xff] }
 0x2e7   : > { %3464 = vmatpush3.msra.mxu1 %v2936_v48  ;;  %1906 = vmatpush1.msra.mxu0 %v1887_v5  ;;  %v1849_v5 = vld [vmem:[%s5577_s6 + $0x8] sm:$0xff] }
 0x2e8   : > { %3465 = vmatprep.subr.mxu1 %v3732_v2  ;;  %1907 = vmatprep.subr.mxu0 %v1886_v7 }
 0x2e9   : > { %3466 = vmatpush3.msra.mxu1 %v2935_v49  ;;  %1908 = vmatpush1.msra.mxu0 %v1885_v8  ;;  %v2198_v8 = vld [vmem:[%s5581_s10 + $0x170] sm:$0xff] }
 0x2ea   : > { %3467 = vmatprep.subr.mxu1 %v3732_v2  ;;  %1909 = vmatprep.subr.mxu0 %v1884_v10  ;;  %v2199_v10 = vld [vmem:[%s5581_s10 + $0x178] sm:$0xff] }
 0x2eb   : > { %3468 = vmatpush3.msra.mxu1 %v2934_v50  ;;  %1910 = vmatpush1.msra.mxu0 %v1883_v12  ;;  %v2195_v12 = vld [vmem:[%s5581_s10 + $0x158] sm:$0xff] }
 0x2ec   : > { %3469 = vmatprep.subr.mxu1 %v3732_v2  ;;  %1911 = vmatprep.subr.mxu0 %v1882_v14  ;;  %v2196_v14 = vld [vmem:[%s5581_s10 + $0x160] sm:$0xff] }
 0x2ed   : > { %3470 = vmatpush3.msra.mxu1 %v2933_v51  ;;  %1912 = vmatpush1.msra.mxu0 %v1881_v15  ;;  %v2192_v15 = vld [vmem:[%s5581_s10 + $0x140] sm:$0xff] }
 0x2ee   : > { %3471 = vmatprep.subr.mxu1 %v3732_v2  ;;  %1913 = vmatprep.subr.mxu0 %v1880_v17  ;;  %v2193_v17 = vld [vmem:[%s5581_s10 + $0x148] sm:$0xff] }
 0x2ef   : > { %3472 = vmatpush3.msra.mxu1 %v2932_v52  ;;  %1914 = vmatpush1.msra.mxu0 %v1879_v19  ;;  %v2188_v19 = vld [vmem:[%s5581_s10 + $0x120] sm:$0xff] }
 0x2f0   : > { %3473 = vmatprep.subr.mxu1 %v3732_v2  ;;  %1915 = vmatprep.subr.mxu0 %v1878_v20  ;;  %v2190_v20 = vld [vmem:[%s5581_s10 + $0x130] sm:$0xff] }
 0x2f1   : > { %3474 = vmatpush3.msra.mxu1 %v2931_v53  ;;  %1916 = vmatpush1.msra.mxu0 %v1877_v21  ;;  %v1863_v53 = vld [vmem:[%s5577_s6 + $0x78] sm:$0xff]  ;;  %v2186_v21 = vld [vmem:[%s5581_s10 + $0x110] sm:$0xff] }
 0x2f2   : > { %3475 = vmatprep.subr.mxu1 %v3732_v2  ;;  %1917 = vmatprep.subr.mxu0 %v1876_v23  ;;  %v2185_v23 = vld [vmem:[%s5581_s10 + $0x108] sm:$0xff] }
 0x2f3   : > { %3476 = vmatpush3.msra.mxu1 %v2930_v54  ;;  %1918 = vmatpush1.msra.mxu0 %v1875_v24  ;;  %v2187_v24 = vld [vmem:[%s5581_s10 + $0x118] sm:$0xff] }
 0x2f4   : > { %3478 = vmatmul.mubr.f32.vlgmr.msra.gmra.mxu1 %v1753_v55  ;;  %3480 = vmatprep.subr.mxu1 %v3732_v2  ;;  %v1862_v55 = vld [vmem:[%s5577_s6 + $0x70] sm:$0xff] }
 0x2f5   : > { %3512 = vmatprep.mubr.msk.f32.mxu1 %vm3733_vm0, %v3732_v2  ;;  %3481 = vmatpush3.msra.mxu1 %v1984_v60  ;;  %v1857_v60 = vld [vmem:[%s5577_s6 + $0x48] sm:$0xff] }
 0x2f6   : > { %3482 = vmatprep.subr.mxu1 %v3732_v2  ;;  %1919 = vmatprep.subr.mxu0 %v1874_v25  ;;  %v2183_v25 = vld [vmem:[%s5581_s10 + $0xf8] sm:$0xff] }
 0x2f7   : > { %3483 = vmatpush3.msra.mxu1 %v1983_v62  ;;  %1920 = vmatpush1.msra.mxu0 %v1873_v26  ;;  %v1855_v62 = vld [vmem:[%s5577_s6 + $0x38] sm:$0xff]  ;;  %v2182_v26 = vld [vmem:[%s5581_s10 + $0xf0] sm:$0xff] }
 0x2f8   : > { %3484 = vmatprep.subr.mxu1 %v3732_v2  ;;  %1921 = vmatprep.subr.mxu0 %v1872_v27  ;;  %v2184_v27 = vld [vmem:[%s5581_s10 + $0x100] sm:$0xff] }
 0x2f9   : > { %3485 = vmatpush3.msra.mxu1 %v1982_v1  ;;  %1922 = vmatpush1.msra.mxu0 %v1871_v28  ;;  %v1852_v1 = vld [vmem:[%s5577_s6 + $0x20] sm:$0xff] }
 0x2fa   : > { %3486 = vmatprep.subr.mxu1 %v3732_v2  ;;  %1923 = vmatprep.subr.mxu0 %v1870_v30  ;;  %v2180_v28 = vld [vmem:[%s5581_s10 + $0xe0] sm:$0xff]  ;;  %v2181_v30 = vld [vmem:[%s5581_s10 + $0xe8] sm:$0xff] }
 0x2fb   : > { %3487 = vmatpush3.msra.mxu1 %v1981_v6  ;;  %1924 = vmatpush1.msra.mxu0 %v1869_v31  ;;  %v1848_v6 = vld [vmem:[%s5577_s6] sm:$0xff]  ;;  %v2177_v31 = vld [vmem:[%s5581_s10 + $0xc8] sm:$0xff] }
 0x2fc   : > { %3488 = vmatprep.subr.mxu1 %v3732_v2  ;;  %1925 = vmatprep.subr.mxu0 %v1868_v33  ;;  %v2178_v33 = vld [vmem:[%s5581_s10 + $0xd0] sm:$0xff] }
 0x2fd   : > { %3489 = vmatpush3.msra.mxu1 %v1980_v9  ;;  %1926 = vmatpush1.msra.mxu0 %v1867_v34  ;;  %v2197_v9 = vld [vmem:[%s5581_s10 + $0x168] sm:$0xff]  ;;  %v2174_v34 = vld [vmem:[%s5581_s10 + $0xb0] sm:$0xff] }
 0x2fe   : > { %3490 = vmatprep.subr.mxu1 %v3732_v2  ;;  %1927 = vmatprep.subr.mxu0 %v1866_v37  ;;  %v2175_v37 = vld [vmem:[%s5581_s10 + $0xb8] sm:$0xff] }
 0x2ff   : > { %3491 = vmatpush3.msra.mxu1 %v1979_v13  ;;  %1928 = vmatpush1.msra.mxu0 %v1865_v22  ;;  %v2194_v13 = vld [vmem:[%s5581_s10 + $0x150] sm:$0xff]  ;;  %v2171_v22 = vld [vmem:[%s5581_s10 + $0x98] sm:$0xff] }
 0x300   : > { %3492 = vmatprep.subr.mxu1 %v3732_v2  ;;  %3515 = vmatprep.subr.mxu0 %v3732_v2 }
 0x301   : > { %3493 = vmatpush3.msra.mxu1 %v1978_v16  ;;  %v2191_v16 = vld [vmem:[%s5581_s10 + $0x138] sm:$0xff] }
 0x302   : > { %3494 = vmatprep.subr.mxu1 %v3732_v2 }
 0x303   : > { %3495 = vmatpush3.msra.mxu1 %v1977_v18  ;;  %v2189_v18 = vld [vmem:[%s5581_s10 + $0x128] sm:$0xff] }
 0x304   : > { %3496 = vmatprep.subr.mxu1 %v3732_v2 }
 0x305   : > { %3497 = vmatpush3.msra.mxu1 %v1976_v29  ;;  %v2179_v29 = vld [vmem:[%s5581_s10 + $0xd8] sm:$0xff] }
 0x306   : > { %3498 = vmatprep.subr.mxu1 %v3732_v2 }
 0x307   : > { %3499 = vmatpush3.msra.mxu1 %v1975_v32  ;;  %v2176_v32 = vld [vmem:[%s5581_s10 + $0xc0] sm:$0xff] }
 0x308   : > { %3500 = vmatprep.subr.mxu1 %v3732_v2 }
 0x309   : > { %3501 = vmatpush3.msra.mxu1 %v1974_v36  ;;  %v2173_v36 = vld [vmem:[%s5581_s10 + $0xa8] sm:$0xff] }
 0x30a   : > { %3502 = vmatprep.subr.mxu1 %v3732_v2 }
 0x30b   : > { %3503 = vmatpush3.msra.mxu1 %v1973_v38  ;;  %v2170_v38 = vld [vmem:[%s5581_s10 + $0x90] sm:$0xff] }
 0x30c   : > { %3504 = vmatprep.subr.mxu1 %v3732_v2 }
 0x30d   : > { %3505 = vmatpush3.msra.mxu1 %v1972_v39  ;;  %v2172_v39 = vld [vmem:[%s5581_s10 + $0xa0] sm:$0xff] }
 0x30e   : > { %3506 = vmatprep.subr.mxu1 %v3732_v2 }
 0x30f   : > { %3507 = vmatpush3.msra.mxu1 %v1971_v40  ;;  %v2168_v40 = vld [vmem:[%s5581_s10 + $0x80] sm:$0xff] }
 0x310   : > { %3508 = vmatprep.subr.mxu1 %v3732_v2 }
 0x311   : > { %3509 = vmatpush3.msra.mxu1 %v1970_v41  ;;  %v2167_v41 = vld [vmem:[%s5581_s10 + $0x78] sm:$0xff] }
 0x312   : > { %3510 = vmatprep.subr.mxu1 %v3732_v2 }
 0x313   : > { %3511 = vmatpush3.msra.mxu1 %v1969_v42  ;;  %v2169_v42 = vld [vmem:[%s5581_s10 + $0x88] sm:$0xff] }
 0x314   : > { %2200 = vmatprep.subr.mxu1 %v2198_v8  ;;  %v5285_v8 = vld [vmem:[#allocation5 + $0xa] sm:$0x3] }
 0x394   : > { %v1679_v43 = vpop.f32.mrf.mxu1 }
 0x396   : > { %v3409_v44 = vpop.f32.mrf.mxu1 }
 0x397   : > { %v2164_v44 = vld [vmem:[%s5581_s10 + $0x60] sm:$0xff] }
 0x39d   : > { %v1749_v45 = vpop.f32.mrf.mxu0 }
 0x39e   : > { %v1750_v47 = vadd.f32 %v1749_v45, %v1679_v43  ;;  %v2165_v43 = vld [vmem:[%s5581_s10 + $0x68] sm:$0xff]  ;;  %v2166_v45 = vld [vmem:[%s5581_s10 + $0x70] sm:$0xff] }
 0x39f   : > { %v3444_v46 = vpop.f32.mrf.mxu0 }
 0x3a0   : > { %v2162_v46 = vld [vmem:[%s5581_s10 + $0x50] sm:$0xff] }
 0x3b4   : > { %v1837_v48 = vpop.f32.mrf.mxu1 }
 0x3b5   : > { %v1841_v49 = vadd.f32 %v1837_v48, %v1750_v47  ;;  %v2161_v47 = vld [vmem:[%s5581_s10 + $0x48] sm:$0xff]  ;;  %v2163_v48 = vld [vmem:[%s5581_s10 + $0x58] sm:$0xff] }
 0x3b6   : > { %v3479_v50 = vpop.f32.mrf.mxu1 }
 0x3b7   : > { %v1842_v51 = vmax.f32 %v1841_v49, 0.0  ;;  %v2159_v49 = vld [vmem:[%s5581_s10 + $0x38] sm:$0xff]  ;;  %v2158_v50 = vld [vmem:[%s5581_s10 + $0x30] sm:$0xff] }
 0x3b9   : > { %v1844_v52 = vadd.f32 %v1842_v51, %v4479_v11  ;;  %v1861_v11 = vld [vmem:[%s5577_s6 + $0x68] sm:$0xff]  ;;  %v2160_v51 = vld [vmem:[%s5581_s10 + $0x40] sm:$0xff] }
 0x3bb   : > { %v1845_v54 = vsel %vm4819_vm5, %v1844_v52, 0.0  ;;  %3719 = vmatmul.mubr.msk.f32.vlgmr.msra.gmra.mxu0 %vm4819_vm5, %v1844_v52  ;;  %v2156_v52 = vld [vmem:[%s5581_s10 + $0x20] sm:$0xff] }
 0x3bc   : > { %1846 = vst [vmem:[#allocation4 + $0x2] sm:$0xff] %v1845_v54  ;;  %3516 = vmatpush3.msra.mxu0 %v1863_v53  ;;  %3547 = vmatprep.mubr.msk.f32.mxu0 %vm3733_vm0, %v3732_v2  ;;  %v2155_v53 = vld [vmem:[%s5581_s10 + $0x18] sm:$0xff]  ;;  %v2157_v54 = vld [vmem:[%s5581_s10 + $0x28] sm:$0xff] }
 0x3bd   : > { %3517 = vmatprep.subr.mxu0 %v3732_v2 }
 0x3be   : > { %3518 = vmatpush3.msra.mxu0 %v1862_v55  ;;  %v2153_v55 = vld [vmem:[%s5581_s10 + $0x8] sm:$0xff] }
 0x3bf   : > { %3519 = vmatprep.subr.mxu0 %v3732_v2 }
 0x3c0   : > { %3520 = vmatpush3.msra.mxu0 %v1861_v11  ;;  %v2152_v11 = vld [vmem:[%s5581_s10] sm:$0xff] }
 0x3c1   : > { %3521 = vmatprep.subr.mxu0 %v3732_v2 }
 0x3c2   : > { %3522 = vmatpush3.msra.mxu0 %v1860_v56  ;;  %v2154_v56 = vld [vmem:[%s5581_s10 + $0x10] sm:$0xff] }
 0x3c3   : > { %v1968_v58 = vld [vmem:[#allocation4 + $0x3] sm:$0xff]  ;;  %3523 = vmatprep.subr.mxu0 %v3732_v2 }
 0x3c4   : > { %3513 = vmatmul.mubr.f32.vlgmr.msra.gmra.mxu1 %v1968_v58  ;;  %3524 = vmatpush3.msra.mxu0 %v1859_v57  ;;  %v1847_v7 = vld [vmem:[#allocation4 + $0x1] sm:$0xff]  ;;  %v2400_v57 = vld [vmem:[%s5582_s11 + $0x170] sm:$0xff]  ;;  %v2401_v58 = vld [vmem:[%s5582_s11 + $0x178] sm:$0xff] }
 0x3c5   : > { %2264 = vmatprep.mubr.f32.mxu1 %v3732_v2  ;;  %3525 = vmatprep.subr.mxu0 %v3732_v2 }
 0x3c6   : > { %3526 = vmatpush3.msra.mxu0 %v1858_v59  ;;  %2201 = vmatpush1.msra.mxu1 %v2197_v9 }
 0x3c7   : > { %3527 = vmatprep.subr.mxu0 %v3732_v2  ;;  %2202 = vmatprep.subr.mxu1 %v2195_v12  ;;  %v2396_v12 = vld [vmem:[%s5582_s11 + $0x150] sm:$0xff] }
 0x3c8   : > { %3528 = vmatpush3.msra.mxu0 %v1857_v60  ;;  %2203 = vmatpush1.msra.mxu1 %v2194_v13  ;;  %v2398_v13 = vld [vmem:[%s5582_s11 + $0x160] sm:$0xff] }
 0x3c9   : > { %3529 = vmatprep.subr.mxu0 %v3732_v2  ;;  %2204 = vmatprep.subr.mxu1 %v2192_v15  ;;  %v2393_v15 = vld [vmem:[%s5582_s11 + $0x138] sm:$0xff] }
 0x3ca   : > { %3530 = vmatpush3.msra.mxu0 %v1856_v61  ;;  %2205 = vmatpush1.msra.mxu1 %v2191_v16  ;;  %v2395_v16 = vld [vmem:[%s5582_s11 + $0x148] sm:$0xff] }
 0x3cb   : > { %3531 = vmatprep.subr.mxu0 %v3732_v2  ;;  %2206 = vmatprep.subr.mxu1 %v2189_v18  ;;  %v2390_v18 = vld [vmem:[%s5582_s11 + $0x120] sm:$0xff] }
 0x3cc   : > { %3532 = vmatpush3.msra.mxu0 %v1855_v62  ;;  %2207 = vmatpush1.msra.mxu1 %v2188_v19  ;;  %v2392_v19 = vld [vmem:[%s5582_s11 + $0x130] sm:$0xff] }
 0x3cd   : > { %3533 = vmatprep.subr.mxu0 %v3732_v2  ;;  %2208 = vmatprep.subr.mxu1 %v2186_v21  ;;  %v2387_v21 = vld [vmem:[%s5582_s11 + $0x108] sm:$0xff] }
 0x3ce   : > { %3534 = vmatpush3.msra.mxu0 %v1854_v63  ;;  %2209 = vmatpush1.msra.mxu1 %v2185_v23  ;;  %v2389_v23 = vld [vmem:[%s5582_s11 + $0x118] sm:$0xff] }
 0x3cf   : > { %3535 = vmatprep.subr.mxu0 %v3732_v2  ;;  %2210 = vmatprep.subr.mxu1 %v2183_v25  ;;  %v2384_v25 = vld [vmem:[%s5582_s11 + $0xf0] sm:$0xff] }
 0x3d0   : > { %3536 = vmatpush3.msra.mxu0 %v1853_v0  ;;  %2211 = vmatpush1.msra.mxu1 %v2182_v26  ;;  %v2386_v26 = vld [vmem:[%s5582_s11 + $0x100] sm:$0xff] }
 0x3d1   : > { %3537 = vmatprep.subr.mxu0 %v3732_v2  ;;  %2212 = vmatprep.subr.mxu1 %v2180_v28  ;;  %v2381_v28 = vld [vmem:[%s5582_s11 + $0xd8] sm:$0xff] }
 0x3d2   : > { %3538 = vmatpush3.msra.mxu0 %v1852_v1  ;;  %2213 = vmatpush1.msra.mxu1 %v2179_v29  ;;  %v2383_v29 = vld [vmem:[%s5582_s11 + $0xe8] sm:$0xff] }
 0x3d3   : > { %3539 = vmatprep.subr.mxu0 %v3732_v2  ;;  %2214 = vmatprep.subr.mxu1 %v2177_v31  ;;  %v2378_v31 = vld [vmem:[%s5582_s11 + $0xc0] sm:$0xff] }
 0x3d4   : > { %3540 = vmatpush3.msra.mxu0 %v1851_v3  ;;  %2215 = vmatpush1.msra.mxu1 %v2176_v32  ;;  %v2380_v32 = vld [vmem:[%s5582_s11 + $0xd0] sm:$0xff] }
 0x3d5   : > { %3541 = vmatprep.subr.mxu0 %v3732_v2  ;;  %2216 = vmatprep.subr.mxu1 %v2174_v34  ;;  %v2375_v34 = vld [vmem:[%s5582_s11 + $0xa8] sm:$0xff] }
 0x3d6   : > { %3542 = vmatpush3.msra.mxu0 %v1850_v4  ;;  %2217 = vmatpush1.msra.mxu1 %v2173_v36  ;;  %v2377_v36 = vld [vmem:[%s5582_s11 + $0xb8] sm:$0xff] }
 0x3d7   : > { %3543 = vmatprep.subr.mxu0 %v3732_v2  ;;  %2218 = vmatprep.subr.mxu1 %v2171_v22  ;;  %v2372_v22 = vld [vmem:[%s5582_s11 + $0x90] sm:$0xff] }
 0x3d8   : > { %3544 = vmatpush3.msra.mxu0 %v1849_v5  ;;  %2219 = vmatpush1.msra.mxu1 %v2170_v38  ;;  %v2374_v38 = vld [vmem:[%s5582_s11 + $0xa0] sm:$0xff] }
 0x3d9   : > { %3545 = vmatprep.subr.mxu0 %v3732_v2  ;;  %2220 = vmatprep.subr.mxu1 %v2168_v40  ;;  %v2369_v40 = vld [vmem:[%s5582_s11 + $0x78] sm:$0xff] }
 0x3da   : > { %3546 = vmatpush3.msra.mxu0 %v1848_v6  ;;  %2221 = vmatpush1.msra.mxu1 %v2167_v41  ;;  %v2371_v41 = vld [vmem:[%s5582_s11 + $0x88] sm:$0xff] }
 0x3db   : > { %3548 = vmatmul.mubr.f32.vlgmr.msra.gmra.mxu0 %v1847_v7  ;;  %3550 = vmatprep.subr.mxu0 %v2199_v10  ;;  %v2399_v7 = vld [vmem:[%s5582_s11 + $0x168] sm:$0xff] }
 0x3dc   : > { %3551 = vmatpush3.msra.mxu0 %v2199_v10  ;;  %2222 = vmatprep.subr.mxu1 %v2165_v43  ;;  %v2397_v10 = vld [vmem:[%s5582_s11 + $0x158] sm:$0xff]  ;;  %v2366_v43 = vld [vmem:[%s5582_s11 + $0x60] sm:$0xff] }
 0x3dd   : > { %3552 = vmatprep.subr.mxu0 %v2196_v14  ;;  %2223 = vmatpush1.msra.mxu1 %v2164_v44  ;;  %v2368_v44 = vld [vmem:[%s5582_s11 + $0x70] sm:$0xff] }
 0x3de   : > { %3553 = vmatpush3.msra.mxu0 %v2196_v14  ;;  %2224 = vmatprep.subr.mxu1 %v2162_v46  ;;  %v2394_v14 = vld [vmem:[%s5582_s11 + $0x140] sm:$0xff]  ;;  %v2363_v46 = vld [vmem:[%s5582_s11 + $0x48] sm:$0xff] }
 0x3df   : > { %3554 = vmatprep.subr.mxu0 %v2193_v17  ;;  %2225 = vmatpush1.msra.mxu1 %v2161_v47  ;;  %v2365_v47 = vld [vmem:[%s5582_s11 + $0x58] sm:$0xff] }
 0x3e0   : > { %3555 = vmatpush3.msra.mxu0 %v2193_v17  ;;  %2226 = vmatprep.subr.mxu1 %v2159_v49  ;;  %v2391_v17 = vld [vmem:[%s5582_s11 + $0x128] sm:$0xff]  ;;  %v2362_v49 = vld [vmem:[%s5582_s11 + $0x40] sm:$0xff] }
 0x3e1   : > { %3556 = vmatprep.subr.mxu0 %v2190_v20  ;;  %2227 = vmatpush1.msra.mxu1 %v2158_v50  ;;  %v2360_v50 = vld [vmem:[%s5582_s11 + $0x30] sm:$0xff] }
 0x3e2   : > { %3557 = vmatpush3.msra.mxu0 %v2190_v20  ;;  %2228 = vmatprep.subr.mxu1 %v2156_v52  ;;  %v2388_v20 = vld [vmem:[%s5582_s11 + $0x110] sm:$0xff]  ;;  %v2359_v52 = vld [vmem:[%s5582_s11 + $0x28] sm:$0xff] }
 0x3e3   : > { %3558 = vmatprep.subr.mxu0 %v2187_v24  ;;  %2229 = vmatpush1.msra.mxu1 %v2155_v53  ;;  %v2357_v53 = vld [vmem:[%s5582_s11 + $0x18] sm:$0xff] }
 0x3e4   : > { %3559 = vmatpush3.msra.mxu0 %v2187_v24  ;;  %2230 = vmatprep.subr.mxu1 %v2153_v55  ;;  %v2385_v24 = vld [vmem:[%s5582_s11 + $0xf8] sm:$0xff]  ;;  %v2354_v55 = vld [vmem:[%s5582_s11] sm:$0xff] }
 0x3e5   : > { %3560 = vmatprep.subr.mxu0 %v2184_v27  ;;  %2231 = vmatpush1.msra.mxu1 %v2152_v11  ;;  %v2356_v11 = vld [vmem:[%s5582_s11 + $0x10] sm:$0xff] }
 0x3e6   : > { %3561 = vmatpush3.msra.mxu0 %v2184_v27  ;;  %2402 = vmatprep.subr.mxu1 %v2400_v57  ;;  %v2382_v27 = vld [vmem:[%s5582_s11 + $0xe0] sm:$0xff]  ;;  %v2353_v57 = vld [vmem:[#allocation6 + $0xa] sm:$0x3] }
 0x3e7   : > { %3562 = vmatprep.subr.mxu0 %v2181_v30 }
 0x3e8   : > { %3563 = vmatpush3.msra.mxu0 %v2181_v30  ;;  %v2379_v30 = vld [vmem:[%s5582_s11 + $0xc8] sm:$0xff] }
 0x3e9   : > { %3564 = vmatprep.subr.mxu0 %v2178_v33 }
 0x3ea   : > { %3565 = vmatpush3.msra.mxu0 %v2178_v33  ;;  %v2376_v33 = vld [vmem:[%s5582_s11 + $0xb0] sm:$0xff] }
 0x3eb   : > { %3566 = vmatprep.subr.mxu0 %v2175_v37 }
 0x3ec   : > { %3567 = vmatpush3.msra.mxu0 %v2175_v37  ;;  %v2373_v37 = vld [vmem:[%s5582_s11 + $0x98] sm:$0xff] }
 0x3ed   : > { %3568 = vmatprep.subr.mxu0 %v2172_v39 }
 0x3ee   : > { %3569 = vmatpush3.msra.mxu0 %v2172_v39  ;;  %v2370_v39 = vld [vmem:[%s5582_s11 + $0x80] sm:$0xff] }
 0x3ef   : > { %3570 = vmatprep.subr.mxu0 %v2169_v42 }
 0x3f0   : > { %3571 = vmatpush3.msra.mxu0 %v2169_v42  ;;  %v2367_v42 = vld [vmem:[%s5582_s11 + $0x68] sm:$0xff] }
 0x3f1   : > { %3572 = vmatprep.subr.mxu0 %v2166_v45 }
 0x3f2   : > { %3573 = vmatpush3.msra.mxu0 %v2166_v45  ;;  %v2364_v45 = vld [vmem:[%s5582_s11 + $0x50] sm:$0xff] }
 0x3f3   : > { %3574 = vmatprep.subr.mxu0 %v2163_v48 }
 0x3f4   : > { %3575 = vmatpush3.msra.mxu0 %v2163_v48  ;;  %v2361_v48 = vld [vmem:[%s5582_s11 + $0x38] sm:$0xff] }
 0x3f5   : > { %3576 = vmatprep.subr.mxu0 %v2160_v51 }
 0x3f6   : > { %3577 = vmatpush3.msra.mxu0 %v2160_v51  ;;  %v2358_v51 = vld [vmem:[%s5582_s11 + $0x20] sm:$0xff] }
 0x3f7   : > { %3578 = vmatprep.subr.mxu0 %v2157_v54 }
 0x3f8   : > { %3579 = vmatpush3.msra.mxu0 %v2157_v54  ;;  %v2355_v54 = vld [vmem:[%s5582_s11 + $0x8] sm:$0xff] }
 0x3f9   : > { %3580 = vmatprep.subr.mxu0 %v2154_v56 }
 0x3fa   : > { %3581 = vmatpush3.msra.mxu0 %v2154_v56  ;;  %v2571_v56 = vld [vmem:[%s5583_s12 + $0x78] sm:$0xff] }
 0x3fb   : > { %3585 = vmatprep.subr.mxu0 %v2401_v58 }
 0x47b   : > { %v1963_v59 = vpop.f32.mrf.mxu0 }
 0x47d   : > { %v1965_v61 = vpop.f32.mrf.mxu0 }
 0x484   : > { %v2051_v60 = vpop.f32.mrf.mxu1 }
 0x485   : > { %v2128_v62 = vadd.f32 %v2051_v60, %v1965_v61  ;;  %v2148_v60 = vld [vmem:[%s5580_s9 + $0x70] sm:$0xff] }
 0x486   : > { %v3514_v63 = vpop.f32.mrf.mxu1 }
 0x487   : > { %v5277_v0 = vmax.f32 %v2128_v62, 0.0  ;;  %v2147_v62 = vld [vmem:[%s5580_s9 + $0x68] sm:$0xff]  ;;  %v2568_v63 = vld [vmem:[%s5583_s12 + $0x60] sm:$0xff] }
 0x489   : > { %v2130_v1 = vsel %vm4819_vm5, %v5277_v0, 0.0 }
 0x48a   : > { %2131 = vst [vmem:[#allocation6 + $0x2] sm:$0xff] %v2130_v1  ;;  %v2146_v1 = vld [vmem:[%s5580_s9 + $0x60] sm:$0xff] }
 0x491   : > { %v2132_v61 = vld [vmem:[#allocation6 + $0x1] sm:$0xff] }
 0x49b   : > { %v2121_v3 = vpop.f32.mrf.mxu0 }
 0x49c   : > { %v2122_v4 = vadd.f32 %v2121_v3, %v1963_v59  ;;  %v2570_v59 = vld [vmem:[%s5583_s12 + $0x70] sm:$0xff]  ;;  %v2145_v3 = vld [vmem:[%s5580_s9 + $0x58] sm:$0xff] }
 0x49d   : > { %v3549_v5 = vpop.f32.mrf.mxu0 }
 0x49e   : > { %v2125_v6 = vmax.f32 %v2122_v4, 0.0  ;;  %v2566_v4 = vld [vmem:[%s5583_s12 + $0x50] sm:$0xff] }
 0x49f   : > { %v2144_v5 = vld [vmem:[%s5580_s9 + $0x50] sm:$0xff] }
 0x4a0   : > { %v2126_v9 = vsel %vm4819_vm5, %v2125_v6, 0.0  ;;  %3720 = vmatmul.mubr.msk.f32.vlgmr.msra.gmra.mxu1 %vm4819_vm5, %v2125_v6  ;;  %3721 = vmatprep.mubr.msk.f32.mxu0 %vm4819_vm5, %v2125_v6  ;;  %v2565_v6 = vld [vmem:[%s5583_s12 + $0x48] sm:$0xff] }
 0x4a1   : > { %2127 = vst [vmem:[#allocation5 + $0x2] sm:$0xff] %v2126_v9  ;;  %2403 = vmatpush1.msra.mxu1 %v2399_v7  ;;  %3583 = vmatmul.mubr.f32.vlgmr.msra.gmra.mxu0 %v5285_v8  ;;  %v2143_v7 = vld [vmem:[%s5580_s9 + $0x48] sm:$0xff]  ;;  %v2142_v9 = vld [vmem:[%s5580_s9 + $0x40] sm:$0xff] }
 0x4a2   : > { %2404 = vmatprep.subr.mxu1 %v2397_v10  ;;  %3586 = vmatpush3.msra.mxu0 %v2401_v58  ;;  %v2149_v58 = vld [vmem:[%s5580_s9 + $0x78] sm:$0xff] }
 0x4a3   : > { %2405 = vmatpush1.msra.mxu1 %v2396_v12  ;;  %3587 = vmatprep.subr.mxu0 %v2398_v13  ;;  %v2563_v10 = vld [vmem:[%s5583_s12 + $0x38] sm:$0xff] }
 0x4a4   : > { %3722 = vmatprep.mubr.msk.f32.mxu0 %vm4819_vm5, %v5277_v0  ;;  %2406 = vmatprep.subr.mxu1 %v2394_v14  ;;  %v2141_v12 = vld [vmem:[%s5580_s9 + $0x38] sm:$0xff]  ;;  %v2140_v14 = vld [vmem:[%s5580_s9 + $0x30] sm:$0xff] }
 0x4a5   : > { %3588 = vmatpush3.msra.mxu0 %v2398_v13  ;;  %2407 = vmatpush1.msra.mxu1 %v2393_v15  ;;  %v2562_v13 = vld [vmem:[%s5583_s12 + $0x30] sm:$0xff]  ;;  %v2561_v15 = vld [vmem:[%s5583_s12 + $0x28] sm:$0xff] }
 0x4a6   : > { %3589 = vmatprep.subr.mxu0 %v2395_v16  ;;  %2408 = vmatprep.subr.mxu1 %v2391_v17  ;;  %v2560_v17 = vld [vmem:[%s5583_s12 + $0x20] sm:$0xff] }
 0x4a7   : > { %3590 = vmatpush3.msra.mxu0 %v2395_v16  ;;  %2409 = vmatpush1.msra.mxu1 %v2390_v18  ;;  %v2139_v16 = vld [vmem:[%s5580_s9 + $0x28] sm:$0xff]  ;;  %v2138_v18 = vld [vmem:[%s5580_s9 + $0x20] sm:$0xff] }
 0x4a8   : > { %3591 = vmatprep.subr.mxu0 %v2392_v19  ;;  %2410 = vmatprep.subr.mxu1 %v2388_v20  ;;  %v2137_v20 = vld [vmem:[%s5580_s9 + $0x18] sm:$0xff] }
 0x4a9   : > { %3592 = vmatpush3.msra.mxu0 %v2392_v19  ;;  %2411 = vmatpush1.msra.mxu1 %v2387_v21  ;;  %v2559_v19 = vld [vmem:[%s5583_s12 + $0x18] sm:$0xff]  ;;  %v2558_v21 = vld [vmem:[%s5583_s12 + $0x10] sm:$0xff] }
 0x4aa   : > { %3593 = vmatprep.subr.mxu0 %v2389_v23  ;;  %2412 = vmatprep.subr.mxu1 %v2385_v24  ;;  %v2557_v24 = vld [vmem:[%s5583_s12 + $0x8] sm:$0xff] }
 0x4ab   : > { %3594 = vmatpush3.msra.mxu0 %v2389_v23  ;;  %2413 = vmatpush1.msra.mxu1 %v2384_v25  ;;  %v2136_v23 = vld [vmem:[%s5580_s9 + $0x10] sm:$0xff]  ;;  %v2135_v25 = vld [vmem:[%s5580_s9 + $0x8] sm:$0xff] }
 0x4ac   : > { %3595 = vmatprep.subr.mxu0 %v2386_v26  ;;  %2414 = vmatprep.subr.mxu1 %v2382_v27  ;;  %v2134_v27 = vld [vmem:[%s5580_s9] sm:$0xff] }
 0x4ad   : > { %3596 = vmatpush3.msra.mxu0 %v2386_v26  ;;  %2415 = vmatpush1.msra.mxu1 %v2381_v28  ;;  %v2556_v26 = vld [vmem:[%s5583_s12] sm:$0xff]  ;;  %v2555_v28 = vld [vmem:[#allocation5 + $0xb] sm:$0x3] }
 0x4ae   : > { %3597 = vmatprep.subr.mxu0 %v2383_v29  ;;  %2416 = vmatprep.subr.mxu1 %v2379_v30 }
 0x4af   : > { %3598 = vmatpush3.msra.mxu0 %v2383_v29  ;;  %2417 = vmatpush1.msra.mxu1 %v2378_v31  ;;  %v2133_v29 = vld [vmem:[#allocation6 + $0x9] sm:$0x3] }
 0x4b0   : > { %3599 = vmatprep.subr.mxu0 %v2380_v32  ;;  %2418 = vmatprep.subr.mxu1 %v2376_v33 }
 0x4b1   : > { %3600 = vmatpush3.msra.mxu0 %v2380_v32  ;;  %2419 = vmatpush1.msra.mxu1 %v2375_v34 }
 0x4b2   : > { %3601 = vmatprep.subr.mxu0 %v2377_v36  ;;  %2420 = vmatprep.subr.mxu1 %v2373_v37 }
 0x4b3   : > { %3602 = vmatpush3.msra.mxu0 %v2377_v36  ;;  %2421 = vmatpush1.msra.mxu1 %v2372_v22 }
 0x4b4   : > { %3603 = vmatprep.subr.mxu0 %v2374_v38  ;;  %2422 = vmatprep.subr.mxu1 %v2370_v39 }
 0x4b5   : > { %3604 = vmatpush3.msra.mxu0 %v2374_v38  ;;  %2423 = vmatpush1.msra.mxu1 %v2369_v40 }
 0x4b6   : > { %3605 = vmatprep.subr.mxu0 %v2371_v41  ;;  %2424 = vmatprep.subr.mxu1 %v2367_v42 }
 0x4b7   : > { %3606 = vmatpush3.msra.mxu0 %v2371_v41  ;;  %2425 = vmatpush1.msra.mxu1 %v2366_v43 }
 0x4b8   : > { %3607 = vmatprep.subr.mxu0 %v2368_v44  ;;  %2426 = vmatprep.subr.mxu1 %v2364_v45 }
 0x4b9   : > { %3608 = vmatpush3.msra.mxu0 %v2368_v44  ;;  %2427 = vmatpush1.msra.mxu1 %v2363_v46 }
 0x4ba   : > { %3609 = vmatprep.subr.mxu0 %v2365_v47  ;;  %2270 = vmatprep.mubr.f32.mxu1 %v3732_v2 }
 0x4bb   : > { %2428 = vmatprep.subr.mxu1 %v2361_v48  ;;  %3610 = vmatpush3.msra.mxu0 %v2365_v47 }
 0x4bc   : > { %2271 = vmatmul.mubr.f32.gmra.mxu1 %v5285_v8  ;;  %3611 = vmatprep.subr.mxu0 %v2362_v49  ;;  %v2564_v8 = vld [vmem:[%s5583_s12 + $0x40] sm:$0xff] }
 0x4bd   : > { %2429 = vmatpush1.msra.mxu1 %v2360_v50  ;;  %3612 = vmatpush3.msra.mxu0 %v2362_v49 }
 0x4be   : > { %2430 = vmatprep.subr.mxu1 %v2358_v51  ;;  %3613 = vmatprep.subr.mxu0 %v2359_v52 }
 0x4bf   : > { %2431 = vmatpush1.msra.mxu1 %v2357_v53  ;;  %3614 = vmatpush3.msra.mxu0 %v2359_v52 }
 0x4c0   : > { %2432 = vmatprep.subr.mxu1 %v2355_v54  ;;  %2466 = vmatprep.mubr.f32.mxu1 %v3732_v2 }
 0x4c1   : > { %2433 = vmatpush1.msra.mxu1 %v2354_v55  ;;  %3615 = vmatprep.subr.mxu0 %v2356_v11 }
 0x4c2   : > { %3723 = vmatmul.mubr.msk.f32.vlgmr.msra.gmra.mxu1 %vm4819_vm5, %v5277_v0  ;;  %3616 = vmatpush3.msra.mxu0 %v2356_v11  ;;  %v2554_v0 = vld [vmem:[#allocation5 + $0x3] sm:$0xff] }
 0x4c3   : > { %3620 = vmatprep.subr.mxu1 %v2571_v56  ;;  %3618 = vmatmul.mubr.f32.vlgmr.msra.gmra.mxu0 %v2353_v57 }
 0x4c4   : > { %3621 = vmatpush3.msra.mxu1 %v2571_v56  ;;  %3655 = vmatprep.subr.mxu0 %v2149_v58 }
 0x4c5   : > { %3622 = vmatprep.subr.mxu1 %v2570_v59  ;;  %3656 = vmatpush3.msra.mxu0 %v2149_v58 }
 0x4c6   : > { %3687 = vmatprep.mubr.f32.mxu0 %v2132_v61  ;;  %2472 = vmatprep.mubr.f32.mxu1 %v3732_v2  ;;  %v2567_v2 = vld [vmem:[%s5583_s12 + $0x58] sm:$0xff] }
 0x4c7   : > { %3623 = vmatpush3.msra.mxu1 %v2570_v59  ;;  %3657 = vmatprep.subr.mxu0 %v2148_v60 }
 0x4c8   : > { %2473 = vmatmul.mubr.f32.gmra.mxu1 %v2353_v57  ;;  %3624 = vmatprep.subr.mxu1 %v2569_v35 }
 0x4c9   : > { %3658 = vmatpush3.msra.mxu0 %v2148_v60  ;;  %3625 = vmatpush3.msra.mxu1 %v2569_v35 }
 0x4ca   : > { %3652 = vmatprep.mubr.f32.mxu1 %v2554_v0  ;;  %3659 = vmatprep.subr.mxu0 %v2147_v62 }
 0x4cb   : > { %3626 = vmatprep.subr.mxu1 %v2568_v63  ;;  %3660 = vmatpush3.msra.mxu0 %v2147_v62 }
 0x4cc   : > { %3627 = vmatpush3.msra.mxu1 %v2568_v63  ;;  %3661 = vmatprep.subr.mxu0 %v2146_v1 }
 0x4cd   : > { %3628 = vmatprep.subr.mxu1 %v2567_v2  ;;  %3662 = vmatpush3.msra.mxu0 %v2146_v1 }
 0x4ce   : > { %3629 = vmatpush3.msra.mxu1 %v2567_v2  ;;  %3663 = vmatprep.subr.mxu0 %v2145_v3 }
 0x4cf   : > { %3630 = vmatprep.subr.mxu1 %v2566_v4  ;;  %3664 = vmatpush3.msra.mxu0 %v2145_v3 }
 0x4d0   : > { %3631 = vmatpush3.msra.mxu1 %v2566_v4  ;;  %3665 = vmatprep.subr.mxu0 %v2144_v5 }
 0x4d1   : > { %3632 = vmatprep.subr.mxu1 %v2565_v6  ;;  %3666 = vmatpush3.msra.mxu0 %v2144_v5 }
 0x4d2   : > { %3633 = vmatpush3.msra.mxu1 %v2565_v6  ;;  %3667 = vmatprep.subr.mxu0 %v2143_v7 }
 0x4d3   : > { %3634 = vmatprep.subr.mxu1 %v2564_v8  ;;  %3668 = vmatpush3.msra.mxu0 %v2143_v7 }
 0x4d4   : > { %3635 = vmatpush3.msra.mxu1 %v2564_v8  ;;  %3669 = vmatprep.subr.mxu0 %v2142_v9 }
 0x4d5   : > { %3636 = vmatprep.subr.mxu1 %v2563_v10  ;;  %3670 = vmatpush3.msra.mxu0 %v2142_v9 }
 0x4d6   : > { %3637 = vmatpush3.msra.mxu1 %v2563_v10  ;;  %3671 = vmatprep.subr.mxu0 %v2141_v12 }
 0x4d7   : > { %3638 = vmatprep.subr.mxu1 %v2562_v13  ;;  %3672 = vmatpush3.msra.mxu0 %v2141_v12 }
 0x4d8   : > { %3639 = vmatpush3.msra.mxu1 %v2562_v13  ;;  %3673 = vmatprep.subr.mxu0 %v2140_v14 }
 0x4d9   : > { %3640 = vmatprep.subr.mxu1 %v2561_v15  ;;  %3674 = vmatpush3.msra.mxu0 %v2140_v14 }
 0x4da   : > { %3641 = vmatpush3.msra.mxu1 %v2561_v15  ;;  %3675 = vmatprep.subr.mxu0 %v2139_v16 }
 0x4db   : > { %3642 = vmatprep.subr.mxu1 %v2560_v17  ;;  %3676 = vmatpush3.msra.mxu0 %v2139_v16 }
 0x4dc   : > { %3643 = vmatpush3.msra.mxu1 %v2560_v17  ;;  %3677 = vmatprep.subr.mxu0 %v2138_v18 }
 0x4dd   : > { %3644 = vmatprep.subr.mxu1 %v2559_v19  ;;  %3678 = vmatpush3.msra.mxu0 %v2138_v18 }
 0x4de   : > { %3645 = vmatpush3.msra.mxu1 %v2559_v19  ;;  %3679 = vmatprep.subr.mxu0 %v2137_v20 }
 0x4df   : > { %3646 = vmatprep.subr.mxu1 %v2558_v21  ;;  %3680 = vmatpush3.msra.mxu0 %v2137_v20 }
 0x4e0   : > { %3647 = vmatpush3.msra.mxu1 %v2558_v21  ;;  %3681 = vmatprep.subr.mxu0 %v2136_v23 }
 0x4e1   : > { %3648 = vmatprep.subr.mxu1 %v2557_v24  ;;  %3682 = vmatpush3.msra.mxu0 %v2136_v23 }
 0x4e2   : > { %3649 = vmatpush3.msra.mxu1 %v2557_v24  ;;  %3683 = vmatprep.subr.mxu0 %v2135_v25 }
 0x4e3   : > { %3650 = vmatprep.subr.mxu1 %v2556_v26  ;;  %3684 = vmatpush3.msra.mxu0 %v2135_v25 }
 0x4e4   : > { %3651 = vmatpush3.msra.mxu1 %v2556_v26  ;;  %3685 = vmatprep.subr.mxu0 %v2134_v27 }
 0x4e5   : > { %3653 = vmatmul.mubr.f32.vlgmr.msra.gmra.mxu1 %v2555_v28  ;;  %3686 = vmatpush3.msra.mxu0 %v2134_v27 }
 0x4e6   : > { %3688 = vmatmul.mubr.f32.vlgmr.msra.gmra.mxu0 %v2133_v29 }
 0x560   : > { %v2266_v30 = vpop.f32.mrf.mxu1 }
 0x561   : > { %v3584_v40 = vpop.f32.mrf.mxu0 }
 0x562   : > { %v5535_v31 = vpop.f32.mrf.mxu1 }
 0x563   : > { %v2343_v41 = vpop.f32.mrf.mxu0 }
 0x57c   : > { %v2272_v32 = vpop.f32.mrf.mxu1 }
 0x57e   : > { %v2274_v33 = vpop.f32.mrf.mxu1 }
 0x582   : > { %v2468_v34 = vpop.f32.mrf.mxu1 }
 0x583   : > { %2724 = vrot.lane.b32.xlu1 %v2468_v34, %s3735_s19  ;;  %v3619_v42 = vpop.f32.mrf.mxu0 }
 0x584   : > { %v2470_v36 = vpop.f32.mrf.mxu1 }
 0x585   : > { %v2545_v43 = vpop.f32.mrf.mxu0 }
 0x588   : > { %v2474_v37 = vpop.f32.mrf.mxu1 }
 0x589   : > { %2726 = vrot.lane.b32.xlu1 %v2474_v37, %s3735_s19 }
 0x58a   : > { %v2476_v22 = vpop.f32.mrf.mxu1 }
 0x58d   : > { %2738 = vrot.lane.b32.xlu1 %v2476_v22, %s3735_s19 }
 0x5a5   : > { %v3654_v38 = vpop.f32.mrf.mxu1 }
 0x5a6   : > { %v3689_v44 = vpop.f32.mrf.mxu0 }
 0x5a7   : > { %v2638_v39 = vpop.f32.mrf.mxu1  ;;  %v2719_v51 = vadd.f32 %v3689_v44, %v2272_v32 }
 0x5a8   : > { %2753 = vrot.lane.b32.xlu0 %v2638_v39, %s3736_s20  ;;  %v2713_v45 = vpop.f32.mrf.mxu0 }
 0x5a9   : > { %v2714_v47 = vadd.f32 %v2713_v45, %v2266_v30 }
 0x5ac   : > { %2755 = vrot.lane.b32.xlu0 %v3654_v38, %s3736_s20 }
 0x5b0   : > { %2736 = vrot.lane.b32.xlu0 %v2470_v36, %s3735_s19 }
 0x5f5   : > { %v2725_v46 = vpop.permute.xlu1 %2724 }
 0x5f6   : > { %v2730_v48 = vadd.f32 %v2725_v46, %v2266_v30  ;;  %v2731_v4 = vadd.f32 %v2725_v46, %v5535_v31 }
 0x5f8   : > { %v2779_v49 = vsel %vm2740_vm6, %v2714_v47, %v2730_v48 }
 0x5f9   : > { %3706 = vtanh.f32 %v2779_v49 }
 0x5fb   : > { %v2727_v50 = vpop.permute.xlu1 %2726 }
 0x5fc   : > { %v2732_v52 = vadd.f32 %v2727_v50, %v2272_v32  ;;  %v2733_v11 = vadd.f32 %v2727_v50, %v2274_v33 }
 0x5fe   : > { %v2780_v53 = vsel %vm2740_vm6, %v2719_v51, %v2732_v52 }
 0x5ff   : > { %3708 = vtanh.f32 %v2780_v53  ;;  %v2739_v54 = vpop.permute.xlu1 %2738 }
 0x600   : > { %v2742_v55 = vsel %vm2740_vm6, %v2727_v50, %v2739_v54  ;;  %v2750_v14 = vadd.f32 %v3584_v40, %v2739_v54 }
 0x601   : > { %v2749_v56 = vadd.f32 %v2742_v55, %v2274_v33 }
 0x603   : > { %v2783_v57 = vsel %vm2781_vm7, %v2733_v11, %v2749_v56 }
 0x604   : > { %3710 = vtanh.f32 %v2783_v57 }
 0x606   : > { %v3707_v58 = vpop.eup %3706 }
 0x607   : > { %2793 = vst [vmem:[%s5550_s24] sm:$0xff] %v3707_v58 }
 0x60c   : > { %v3709_v59 = vpop.eup %3708 }
 0x60d   : > { %2796 = vst [vmem:[%s5550_s24 + $0x18] sm:$0x3] %v3709_v59 }
 0x611   : > { %v3711_v60 = vpop.eup %3710 }
 0x612   : > { %2797 = vst [vmem:[%s5550_s24 + $0x20] sm:$0x3] %v3711_v60 }
 0x61a   : > { %v2754_v61 = vpop.permute.xlu0 %2753 }
 0x61b   : > { %v2759_v35 = vadd.f32 %v2754_v61, %v2470_v36  ;;  %v2760_v62 = vadd.f32 %v2754_v61, %v2545_v43 }
 0x61d   : > { %2769 = vrot.lane.b32.xlu1 %v2760_v62, %s3735_s19  ;;  %2767 = vrot.lane.b32.xlu0 %v2759_v35, %s3735_s19 }
 0x61e   : > { %v2756_v63 = vpop.permute.xlu0 %2755 }
 0x61f   : > { %v2761_v0 = vadd.f32 %v2756_v63, %v2476_v22  ;;  %v2762_v1 = vadd.f32 %v3619_v42, %v2756_v63 }
 0x621   : > { %2773 = vrot.lane.b32.xlu1 %v2762_v1, %s3735_s19  ;;  %2771 = vrot.lane.b32.xlu0 %v2761_v0, %s3735_s19 }
 0x622   : > { %v2737_v2 = vpop.permute.xlu0 %2736 }
 0x623   : > { %v2741_v3 = vsel %vm2740_vm6, %v2725_v46, %v2737_v2  ;;  %v2748_v8 = vadd.f32 %v2737_v2, %v2343_v41 }
 0x624   : > { %v2747_v5 = vadd.f32 %v2741_v3, %v5535_v31 }
 0x626   : > { %v2782_v6 = vsel %vm2781_vm7, %v2731_v4, %v2747_v5 }
 0x627   : > { %3712 = vtanh.f32 %v2782_v6 }
 0x634   : > { %v3713_v7 = vpop.eup %3712 }
 0x635   : > { %2794 = vst [vmem:[%s5550_s24 + $0x8] sm:$0xff] %v3713_v7 }
 0x68f   : > { %v2770_v9 = vpop.permute.xlu1 %2769  ;;  %v2768_v10 = vpop.permute.xlu0 %2767 }
 0x690   : > { %v2775_v12 = vsel %vm2740_vm6, %v2768_v10, %v2770_v9 }
 0x691   : > { %v2785_v13 = vsel %vm2784_vm8, %v2748_v8, %v2775_v12 }
 0x692   : > { %3714 = vtanh.f32 %v2785_v13 }
 0x693   : > { %v2774_v15 = vpop.permute.xlu1 %2773  ;;  %v2772_v16 = vpop.permute.xlu0 %2771 }
 0x694   : > { %v2776_v17 = vsel %vm2740_vm6, %v2772_v16, %v2774_v15 }
 0x695   : > { %v2786_v18 = vsel %vm2784_vm8, %v2750_v14, %v2776_v17 }
 0x696   : > { %3716 = vtanh.f32 %v2786_v18 }
 0x69f   : > { %v3715_v19 = vpop.eup %3714 }
 0x6a0   : > { %2795 = vst [vmem:[%s5550_s24 + $0x10] sm:$0xff] %v3715_v19 }
 0x6a3   : > { %v3717_v20 = vpop.eup %3716 }
 0x6a4   : > { %2798 = vst [vmem:[%s5550_s24 + $0x28] sm:$0x3] %v3717_v20 }
 0x6a5 PF: > { %s23_s25 = sadd.s32 1, %s3730_s25  }
 0x6a6   : > { %p20_p4 = scmp.ge.s32.totalorder %s23_s25, 4  }
 0x6a8   :  { %22 = sbr.rel (!%p20_p4) target bundleno = 1 (0x1), region = 106 }

</bundles_post_ra>
